<compile_context>
chip_gen: v7x
topology: tpu7x:2x2x1
jax: 0.10.0
libtpu: 0.0.40
codegen_flags: <defaults>
</compile_context>

<pallas_src>
import math
import functools

import jax
import jax.numpy as jnp
from jax import lax
from jax.experimental import pallas as pl
from jax.experimental.pallas import tpu as pltpu

SH_C0 = 0.28209479177387814
SH_C1 = 0.4886025119029199

LANE = 128                 # TPU vreg lane width
GB = 8                     # gaussians per sublane block (pinned: fits vregs)
GAUSS_ALIGN = GB * LANE    # gaussian count alignment (1024)
CHUNK = 64                 # render-loop chunk between early-exit checks
UNROLL = 8                 # inner gaussian-loop unroll (sweep {4,8,16})


def _round_up(x, m):
    return ((x + m - 1) // m) * m


# --------------------------------------------------------------------------
# Kernel 1: per-gaussian preprocessing
#   all per-gaussian attributes are laid out (attr, GB, 128) so every
#   elementwise map fills full 8x128 vregs (sublane + lane dense).
# --------------------------------------------------------------------------
def _preprocess_kernel(viewmat_ref, projmat_ref, campos_ref,      # SMEM
                       xyz_ref, scale_ref, rot_ref, opac_ref, sh_ref,  # VMEM
                       out_ref,                                   # VMEM (11,GB,128)
                       *, img_w, img_h, tanfovx, tanfovy,
                       focal_x, focal_y, scaling_modifier):
    Vm = viewmat_ref   # (4,4) row-vector convention: p_view = [p,1] @ Vm
    Pm = projmat_ref   # (4,4) full projection, row-vector convention

    x = xyz_ref[0]     # (GB, 128)
    y = xyz_ref[1]
    z = xyz_ref[2]

    # ---- camera-space point (depth) ----
    tx = x * Vm[0, 0] + y * Vm[1, 0] + z * Vm[2, 0] + Vm[3, 0]
    ty = x * Vm[0, 1] + y * Vm[1, 1] + z * Vm[2, 1] + Vm[3, 1]
    tz = x * Vm[0, 2] + y * Vm[1, 2] + z * Vm[2, 2] + Vm[3, 2]
    # NOTE: this flips the sign of near-zero *negative* depths; harmless
    # because such points are culled below by the tz > 0.2 near-plane test.
    tz_safe = jnp.where(jnp.abs(tz) < 1e-6, 1e-6, tz)

    # ---- full projection -> NDC -> pixel coordinates ----
    hx = x * Pm[0, 0] + y * Pm[1, 0] + z * Pm[2, 0] + Pm[3, 0]
    hy = x * Pm[0, 1] + y * Pm[1, 1] + z * Pm[2, 1] + Pm[3, 1]
    hw = x * Pm[0, 3] + y * Pm[1, 3] + z * Pm[2, 3] + Pm[3, 3]
    inv_w = 1.0 / (hw + 1e-7)            # exact divide (off the per-pixel loop)
    mean_x = ((hx * inv_w + 1.0) * img_w - 1.0) * 0.5
    mean_y = ((hy * inv_w + 1.0) * img_h - 1.0) * 0.5

    # ---- activations ----
    s0 = jnp.exp(scale_ref[0]) * scaling_modifier
    s1 = jnp.exp(scale_ref[1]) * scaling_modifier
    s2 = jnp.exp(scale_ref[2]) * scaling_modifier
    opac = 1.0 / (1.0 + jnp.exp(-opac_ref[0]))          # exact sigmoid

    qr = rot_ref[0]
    qx = rot_ref[1]
    qy = rot_ref[2]
    qz = rot_ref[3]
    qn = lax.rsqrt(qr * qr + qx * qx + qy * qy + qz * qz + 1e-12)
    qr, qx, qy, qz = qr * qn, qx * qn, qy * qn, qz * qn

    # rotation matrix (3DGS quaternion convention: (r, x, y, z))
    R00 = 1.0 - 2.0 * (qy * qy + qz * qz)
    R01 = 2.0 * (qx * qy - qr * qz)
    R02 = 2.0 * (qx * qz + qr * qy)
    R10 = 2.0 * (qx * qy + qr * qz)
    R11 = 1.0 - 2.0 * (qx * qx + qz * qz)
    R12 = 2.0 * (qy * qz - qr * qx)
    R20 = 2.0 * (qx * qz - qr * qy)
    R21 = 2.0 * (qy * qz + qr * qx)
    R22 = 1.0 - 2.0 * (qx * qx + qy * qy)

    s0q, s1q, s2q = s0 * s0, s1 * s1, s2 * s2
    # Cov3D = R diag(s^2) R^T   (6 unique entries)
    c00 = R00 * R00 * s0q + R01 * R01 * s1q + R02 * R02 * s2q
    c01 = R00 * R10 * s0q + R01 * R11 * s1q + R02 * R12 * s2q
    c02 = R00 * R20 * s0q + R01 * R21 * s1q + R02 * R22 * s2q
    c11 = R10 * R10 * s0q + R11 * R11 * s1q + R12 * R12 * s2q
    c12 = R10 * R20 * s0q + R11 * R21 * s1q + R12 * R22 * s2q
    c22 = R20 * R20 * s0q + R21 * R21 * s1q + R22 * R22 * s2q

    # ---- EWA projection of covariance to screen space (exact divides) ----
    limx = 1.3 * tanfovx
    limy = 1.3 * tanfovy
    inv_tz = 1.0 / tz_safe
    txc = jnp.clip(tx * inv_tz, -limx, limx) * tz
    tyc = jnp.clip(ty * inv_tz, -limy, limy) * tz
    inv_tz2 = inv_tz * inv_tz
    j00 = focal_x * inv_tz
    j02 = -focal_x * txc * inv_tz2
    j11 = focal_y * inv_tz
    j12 = -focal_y * tyc * inv_tz2

    # rows of T = J @ R_view   (R_view[a,k] = Vm[k,a] in row-vector convention)
    u0 = j00 * Vm[0, 0] + j02 * Vm[0, 2]
    u1 = j00 * Vm[1, 0] + j02 * Vm[1, 2]
    u2 = j00 * Vm[2, 0] + j02 * Vm[2, 2]
    v0 = j11 * Vm[0, 1] + j12 * Vm[0, 2]
    v1 = j11 * Vm[1, 1] + j12 * Vm[1, 2]
    v2 = j11 * Vm[2, 1] + j12 * Vm[2, 2]

    cov00 = (u0 * u0 * c00 + u1 * u1 * c11 + u2 * u2 * c22
             + 2.0 * (u0 * u1 * c01 + u0 * u2 * c02 + u1 * u2 * c12)) + 0.3
    cov01 = (u0 * v0 * c00 + u1 * v1 * c11 + u2 * v2 * c22
             + (u0 * v1 + u1 * v0) * c01 + (u0 * v2 + u2 * v0) * c02
             + (u1 * v2 + u2 * v1) * c12)
    cov11 = (v0 * v0 * c00 + v1 * v1 * c11 + v2 * v2 * c22
             + 2.0 * (v0 * v1 * c01 + v0 * v2 * c02 + v1 * v2 * c12)) + 0.3

    det = cov00 * cov11 - cov01 * cov01
    det_ok = det != 0.0
    det_inv = 1.0 / jnp.where(det_ok, det, 1.0)          # exact divide
    conic_a = cov11 * det_inv
    conic_b = -cov01 * det_inv
    conic_c = cov00 * det_inv

    mid = 0.5 * (cov00 + cov11)
    lam1 = mid + jnp.sqrt(jnp.maximum(0.1, mid * mid - det))
    radius = jnp.ceil(3.0 * jnp.sqrt(lam1))

    # ---- SH (degree 1) -> RGB (hoisted SH_C1*dir, reused across channels) --
    dx = x - campos_ref[0]
    dy = y - campos_ref[1]
    dz = z - campos_ref[2]
    dn = lax.rsqrt(dx * dx + dy * dy + dz * dz + 1e-12)
    c1x = SH_C1 * dx * dn
    c1y = SH_C1 * dy * dn
    c1z = SH_C1 * dz * dn

    def _sh_channel(ch):
        return (SH_C0 * sh_ref[0 + ch]
                - c1y * sh_ref[3 + ch]
                + c1z * sh_ref[6 + ch]
                - c1x * sh_ref[9 + ch])

    col_r = jnp.maximum(_sh_channel(0) + 0.5, 0.0)
    col_g = jnp.maximum(_sh_channel(1) + 0.5, 0.0)
    col_b = jnp.maximum(_sh_channel(2) + 0.5, 0.0)

    # ---- near-plane / degenerate culling ----
    visible = (tz > 0.2) & det_ok
    opac = jnp.where(visible, opac, 0.0)
    radius = jnp.where(visible, radius, 0.0)

    out_ref[0] = mean_x
    out_ref[1] = mean_y
    # pre-folded conic so the per-pixel kernel computes
    #   power = a'*dx^2 + c'*dy^2 + b'*dx*dy   with no extra scaling/negation
    out_ref[2] = -0.5 * conic_a
    out_ref[3] = -conic_b
    out_ref[4] = -0.5 * conic_c
    out_ref[5] = opac
    out_ref[6] = col_r
    out_ref[7] = col_g
    out_ref[8] = col_b
    out_ref[9] = tz            # depth (for sorting in glue)
    out_ref[10] = radius


# --------------------------------------------------------------------------
# Kernel 2: per-pixel front-to-back alpha compositing
#   walks this tile's binned, depth-ordered gaussian index list (SMEM
#   indirect scalar loads), CHUNK gaussians per outer while-iteration with a
#   whole-tile early exit once every pixel has terminated (T < 1e-4).
# --------------------------------------------------------------------------
def _render_kernel(counts_ref, lists_ref, g_ref, bg_ref, pix_ref, out_ref,
                   *, chunk, unroll):
    # counts_ref : SMEM (n_tiles,)        int32  binned-gaussian count per tile
    # lists_ref  : SMEM (n_tiles, L)      int32  depth-ordered original indices,
    #                                            padded with a zero-opacity slot
    # g_ref      : SMEM (9, N_pad)        f32    unsorted attribute table
    #                                            [mx,my,a',b',c',op,r,g,b]
    # bg_ref     : SMEM (3,)              f32
    # pix_ref    : VMEM (2, TPB, 128)     f32    precomputed pixel x / y
    # out_ref    : VMEM (3, TPB, 128)     f32
    p = pl.program_id(0)
    count = counts_ref[p]
    px = pix_ref[0]
    py = pix_ref[1]

    TPB = out_ref.shape[1]
    LN = out_ref.shape[2]

    def chunk_cond(carry):
        c, T, cr, cg, cb, live = carry
        # one XLU cross-lane reduce + scalar compares per CHUNK gaussians
        return (c < count) & (jnp.max(live) > 0.0)

    def chunk_body(carry):
        c, T, cr, cg, cb, live = carry

        def gauss_body(j, inner):
            T, cr, cg, cb, live = inner
            idx = lists_ref[p, c + j]          # original gaussian id (SMEM)
            mx = g_ref[0, idx]
            my = g_ref[1, idx]
            ca = g_ref[2, idx]                 # -0.5 * conic_a
            cbv = g_ref[3, idx]                # -conic_b
            cc = g_ref[4, idx]                 # -0.5 * conic_c
            op = g_ref[5, idx]
            colr = g_ref[6, idx]
            colg = g_ref[7, idx]
            colb = g_ref[8, idx]

            dx = mx - px
            dy = my - py
            power = (ca * dx) * dx + (cc * dy) * dy + (cbv * dx) * dy
            alpha = jnp.minimum(0.99, op * jnp.exp(power))
            valid = (power <= 0.0) & (alpha >= (1.0 / 255.0))
            w = jnp.where(valid, alpha * T, 0.0)          # shared alpha*T
            # CUDA early-termination: the gaussian that would push T below
            # 1e-4 (and every one after it) is not applied; T stays frozen.
            live = jnp.where(T - w < 1e-4, 0.0, live)
            w = w * live
            cr = cr + colr * w
            cg = cg + colg * w
            cb = cb + colb * w
            T = T - w
            return (T, cr, cg, cb, live)

        T, cr, cg, cb, live = lax.fori_loop(
            0, chunk, gauss_body, (T, cr, cg, cb, live), unroll=unroll)
        return (c + chunk, T, cr, cg, cb, live)

    ones = jnp.ones((TPB, LN), jnp.float32)
    zeros = jnp.zeros((TPB, LN), jnp.float32)
    _, T, cr, cg, cb, _ = lax.while_loop(
        chunk_cond, chunk_body,
        (jnp.int32(0), ones, zeros, zeros, zeros, ones))

    out_ref[0] = cr + T * bg_ref[0]
    out_ref[1] = cg + T * bg_ref[1]
    out_ref[2] = cb + T * bg_ref[2]


# --------------------------------------------------------------------------
# Python wrapper (the `Renderer.forward` equivalent)
# --------------------------------------------------------------------------
def renderer_forward(gaussians, viewpoint, bg_color, scaling_modifier=1.0):
    xyz = gaussians["xyz"]                       # (N, 3)
    N = xyz.shape[0]
    H = int(viewpoint["image"].shape[1])
    W = int(viewpoint["image"].shape[2])
    tanfovx = math.tan(viewpoint["fovx"] * 0.5)
    tanfovy = math.tan(viewpoint["fovy"] * 0.5)
    focal_x = W / (2.0 * tanfovx)
    focal_y = H / (2.0 * tanfovy)

    # ---- pad gaussians: GB=8 sublane blocks, >= 2 preprocess grid steps
    #      (v7x megacore), and >= 1 guaranteed zero-opacity pad slot which is
    #      used as the safe pad index of the per-tile lists ----
    N_pad = _round_up(max(N + 1, 2 * GAUSS_ALIGN), GAUSS_ALIGN)
    NB = N_pad // LANE

    def to_blocks(a, pad_value=0.0):
        a = a.reshape(N, -1).astype(jnp.float32)
        C = a.shape[1]
        pad = jnp.full((N_pad - N, C), pad_value, jnp.float32)
        a = jnp.concatenate([a, pad], axis=0)
        return a.T.reshape(C, NB, LANE)

    xyz_b = to_blocks(gaussians["xyz"])                           # (3, NB,128)
    scale_b = to_blocks(gaussians["scaling"])                     # (3, NB,128)
    rot_b = to_blocks(gaussians["rotation"])                      # (4, NB,128)
    # pad raw opacity very negative so padded gaussians sigmoid to ~0
    opac_b = to_blocks(gaussians["opacity"], pad_value=-30.0)     # (1, NB,128)
    sh_b = to_blocks(gaussians["features"])                       # (12,NB,128)

    viewmat = viewpoint["world_view_transform"].astype(jnp.float32)    # (4, 4)
    projmat = viewpoint["full_proj_transform"].astype(jnp.float32)     # (4, 4)
    campos = viewpoint["camera_center"].astype(jnp.float32)            # (3,)

    pre_kernel = functools.partial(
        _preprocess_kernel,
        img_w=float(W), img_h=float(H),
        tanfovx=float(tanfovx), tanfovy=float(tanfovy),
        focal_x=float(focal_x), focal_y=float(focal_y),
        scaling_modifier=float(scaling_modifier))

    smem = pl.BlockSpec(memory_space=pltpu.MemorySpace.SMEM)

    def gblk(c):
        return pl.BlockSpec((c, GB, LANE), lambda i: (0, i, 0))

    pre = pl.pallas_call(
        pre_kernel,
        out_shape=jax.ShapeDtypeStruct((11, NB, LANE), jnp.float32),
        grid=(NB // GB,),
        in_specs=[smem, smem, smem,
                  gblk(3), gblk(3), gblk(4), gblk(1), gblk(12)],
        out_specs=gblk(11),
        compiler_params=pltpu.CompilerParams(
            dimension_semantics=("parallel",)),
    )(viewmat, projmat, campos, xyz_b, scale_b, rot_b, opac_b, sh_b)

    pre_flat = pre.reshape(11, N_pad)
    g_table = pre_flat[:9]                       # UNSORTED table (no gather)
    mean_x = pre_flat[0]
    mean_y = pre_flat[1]
    depth = pre_flat[9]
    radius = pre_flat[10]
    visible = radius > 0.0

    # ---- lane-dense flattened pixel tiles; >= 2 tiles so both v7x cores
    #      get work on the "parallel" tile axis ----
    P = H * W
    TPB = 16 if P >= 2 * 16 * LANE else 8
    tile_pixels = TPB * LANE
    n_tiles = max(2, _round_up(P, tile_pixels) // tile_pixels)
    P_pad = n_tiles * tile_pixels
    PB = P_pad // LANE

    # ---- glue: compaction + per-tile binning (depth-ordered index lists) ---
    # depth order with culled/padded gaussians pushed to the end
    order = jnp.argsort(jnp.where(visible, depth, jnp.float32(3.0e38)))

    tile_ids = jnp.arange(n_tiles, dtype=jnp.int32)
    band_y0 = ((tile_ids * tile_pixels) // W).astype(jnp.float32)
    band_y1 = (((tile_ids + 1) * tile_pixels - 1) // W).astype(jnp.float32)
    # conservative 3-sigma circle vs. (full-width) row-band overlap test
    in_x = (mean_x + radius >= 0.0) & (mean_x - radius <= float(W - 1))
    ov = ((visible & in_x)[None, :]
          & (mean_y[None, :] + radius[None, :] >= band_y0[:, None])
          & (mean_y[None, :] - radius[None, :] <= band_y1[:, None]))

    ov_sorted = jnp.take(ov, order, axis=1)                 # depth-ordered mask
    counts = jnp.sum(ov_sorted, axis=1).astype(jnp.int32)   # (n_tiles,)
    ranks = jnp.arange(N_pad, dtype=jnp.int32)
    key = jnp.where(ov_sorted, ranks[None, :], N_pad + ranks[None, :])
    perm = jnp.argsort(key, axis=1)                         # overlap-first, depth order
    lists = order[perm]                                     # original gaussian ids
    pad_idx = jnp.int32(N_pad - 1)                          # opacity == 0 slot
    lists = jnp.where(ranks[None, :] < counts[:, None], lists,
                      pad_idx).astype(jnp.int32)            # (n_tiles, N_pad)

    # precomputed pixel coordinates (avoids vector int div/mod in the kernel)
    flat = jnp.arange(P_pad, dtype=jnp.int32)
    pix_xy = jnp.stack([(flat % W).astype(jnp.float32),
                        (flat // W).astype(jnp.float32)]).reshape(2, PB, LANE)

    render_kernel = functools.partial(_render_kernel, chunk=CHUNK, unroll=UNROLL)

    # TODO(synk): for very large N (> ~10K) the SMEM-resident attribute table
    # and per-tile index lists should be streamed from HBM in double-buffered
    # chunks (memory_space=pl.ANY + make_async_copy) instead of held whole.
    rendered = pl.pallas_call(
        render_kernel,
        out_shape=jax.ShapeDtypeStruct((3, PB, LANE), jnp.float32),
        grid=(n_tiles,),
        in_specs=[smem, smem, smem, smem,
                  pl.BlockSpec((2, TPB, LANE), lambda p: (0, p, 0))],
        out_specs=pl.BlockSpec((3, TPB, LANE), lambda p: (0, p, 0)),
        compiler_params=pltpu.CompilerParams(
            dimension_semantics=("parallel",)),
    )(counts, lists, g_table, bg_color.astype(jnp.float32), pix_xy)

    rendered = rendered.reshape(3, P_pad)[:, :P].reshape(3, H, W)

    radii = radius[:N].astype(jnp.int32)
    screenspace_points = jnp.zeros_like(xyz)   # TODO(synk): grad retention n/a
    return {
        "render": rendered,                     # (3, H, W)
        "viewspace_points": screenspace_points, # (N, 3)
        "visibility_filter": radii > 0,         # (N,)
        "radii": radii,                         # (N,)
    }


# --------------------------------------------------------------------------
# deterministic synthetic GaussianModel + viewpoint
# --------------------------------------------------------------------------
def make_inputs():
    key = jax.random.PRNGKey(0)
    k1, k2, k3, k4, k5, k6 = jax.random.split(key, 6)

    N = 256           # number of gaussians
    H = W = 16        # image height / width
    # sh degree 1 -> (1+1)^2 = 4 SH coefficients per channel

    xy = jax.random.uniform(k1, (N, 2), minval=-1.5, maxval=1.5)
    z = jax.random.uniform(k2, (N, 1), minval=3.0, maxval=7.0)
    xyz = jnp.concatenate([xy, z], axis=1).astype(jnp.float32)

    gaussians = {
        "xyz": xyz,
        # raw log-scales (activation exp is inside the kernel)
        "scaling": jnp.log(
            jax.random.uniform(k3, (N, 3), minval=0.1, maxval=0.5)
        ).astype(jnp.float32),
        # raw quaternions (normalized inside the kernel), biased toward identity
        "rotation": (0.2 * jax.random.normal(k4, (N, 4))
                     + jnp.array([1.0, 0.0, 0.0, 0.0])).astype(jnp.float32),
        # raw opacities (sigmoid inside the kernel)
        "opacity": jax.random.normal(k5, (N, 1)).astype(jnp.float32),
        # SH features (N, 4, 3)
        "features": (0.5 * jax.random.normal(k6, (N, 4, 3))).astype(jnp.float32),
    }

    fov = math.radians(60.0)
    znear, zfar = 0.01, 100.0
    tanf = math.tan(fov * 0.5)
    # row-vector convention (p' = [p,1] @ M), camera at origin looking +z
    world_view = jnp.eye(4, dtype=jnp.float32)
    proj_rowvec = jnp.array(
        [[1.0 / tanf, 0.0, 0.0, 0.0],
         [0.0, 1.0 / tanf, 0.0, 0.0],
         [0.0, 0.0, zfar / (zfar - znear), 1.0],
         [0.0, 0.0, -(zfar * znear) / (zfar - znear), 0.0]], dtype=jnp.float32)
    full_proj = world_view @ proj_rowvec

    viewpoint = {
        "image": jnp.zeros((3, H, W), jnp.float32),   # only shape is used
        "fovx": fov,
        "fovy": fov,
        "world_view_transform": world_view,
        "full_proj_transform": full_proj,
        "camera_center": jnp.zeros((3,), jnp.float32),
    }
    bg_color = jnp.array([0.0, 0.0, 0.0], dtype=jnp.float32)
    return gaussians, viewpoint, bg_color


if __name__ == "__main__":
    gaussians, viewpoint, bg_color = make_inputs()
    out = renderer_forward(gaussians, viewpoint, bg_color, scaling_modifier=1.0)
    jax.block_until_ready(out)

    img = out["render"]
    radii = out["radii"]
    assert img.shape == (3, 16, 16) and img.dtype == jnp.float32
    assert radii.shape == (256,) and radii.dtype == jnp.int32
    assert out["visibility_filter"].shape == (256,)
    assert out["viewspace_points"].shape == (256, 3)
    assert bool(jnp.all(jnp.isfinite(img)))
    print("KERNEL_OK")
</pallas_src>

<mosaic_0001>
module attributes {stable_mosaic.version = 11 : i64} {
  func.func @_preprocess_kernel(%arg0: i32, %arg1: memref<4x4xf32, #tpu.memory_space<smem>>, %arg2: memref<4x4xf32, #tpu.memory_space<smem>>, %arg3: memref<3xf32, #tpu.memory_space<smem>>, %arg4: memref<3x8x128xf32, #tpu.memory_space<vmem>>, %arg5: memref<3x8x128xf32, #tpu.memory_space<vmem>>, %arg6: memref<4x8x128xf32, #tpu.memory_space<vmem>>, %arg7: memref<1x8x128xf32, #tpu.memory_space<vmem>>, %arg8: memref<12x8x128xf32, #tpu.memory_space<vmem>>, %arg9: memref<11x8x128xf32, #tpu.memory_space<vmem>>) attributes {dimension_semantics = [#tpu.dimension_semantics<parallel>], iteration_bounds = array<i64: 2>, scalar_prefetch = 0 : i64, scratch_operands = 0 : i64, tpu.core_type = #tpu.core_type<tc>, window_params = [{transform_indices = @transform_0, window_bounds = array<i64: 4, 4>}, {transform_indices = @transform_1, window_bounds = array<i64: 4, 4>}, {transform_indices = @transform_2, window_bounds = array<i64: 3>}, {transform_indices = @transform_3, window_bounds = array<i64: 3, 8, 128>}, {transform_indices = @transform_4, window_bounds = array<i64: 3, 8, 128>}, {transform_indices = @transform_5, window_bounds = array<i64: 4, 8, 128>}, {transform_indices = @transform_6, window_bounds = array<i64: 1, 8, 128>}, {transform_indices = @transform_7, window_bounds = array<i64: 12, 8, 128>}, {transform_indices = @transform_8, window_bounds = array<i64: 11, 8, 128>}]} {
    %c0 = arith.constant 0 : index
    %c0_0 = arith.constant 0 : index
    %c0_1 = arith.constant 0 : index
    %0 = vector.load %arg4[%c0, %c0_0, %c0_1] : memref<3x8x128xf32, #tpu.memory_space<vmem>>, vector<1x8x128xf32>
    %1 = vector.shape_cast %0 : vector<1x8x128xf32> to vector<8x128xf32>
    %c1 = arith.constant 1 : index
    %c0_2 = arith.constant 0 : index
    %c0_3 = arith.constant 0 : index
    %2 = vector.load %arg4[%c1, %c0_2, %c0_3] : memref<3x8x128xf32, #tpu.memory_space<vmem>>, vector<1x8x128xf32>
    %3 = vector.shape_cast %2 : vector<1x8x128xf32> to vector<8x128xf32>
    %c2 = arith.constant 2 : index
    %c0_4 = arith.constant 0 : index
    %c0_5 = arith.constant 0 : index
    %4 = vector.load %arg4[%c2, %c0_4, %c0_5] : memref<3x8x128xf32, #tpu.memory_space<vmem>>, vector<1x8x128xf32>
    %5 = vector.shape_cast %4 : vector<1x8x128xf32> to vector<8x128xf32>
    %c0_6 = arith.constant 0 : index
    %c0_7 = arith.constant 0 : index
    %6 = memref.load %arg1[%c0_6, %c0_7] : memref<4x4xf32, #tpu.memory_space<smem>>
    %7 = vector.broadcast %6 : f32 to vector<8x128xf32>
    %8 = arith.mulf %1, %7 : vector<8x128xf32>
    %c1_8 = arith.constant 1 : index
    %c0_9 = arith.constant 0 : index
    %9 = memref.load %arg1[%c1_8, %c0_9] : memref<4x4xf32, #tpu.memory_space<smem>>
    %10 = vector.broadcast %9 : f32 to vector<8x128xf32>
    %11 = arith.mulf %3, %10 : vector<8x128xf32>
    %12 = arith.addf %8, %11 : vector<8x128xf32>
    %c2_10 = arith.constant 2 : index
    %c0_11 = arith.constant 0 : index
    %13 = memref.load %arg1[%c2_10, %c0_11] : memref<4x4xf32, #tpu.memory_space<smem>>
    %14 = vector.broadcast %13 : f32 to vector<8x128xf32>
    %15 = arith.mulf %5, %14 : vector<8x128xf32>
    %16 = arith.addf %12, %15 : vector<8x128xf32>
    %c3 = arith.constant 3 : index
    %c0_12 = arith.constant 0 : index
    %17 = memref.load %arg1[%c3, %c0_12] : memref<4x4xf32, #tpu.memory_space<smem>>
    %18 = vector.broadcast %17 : f32 to vector<8x128xf32>
    %19 = arith.addf %16, %18 : vector<8x128xf32>
    %c0_13 = arith.constant 0 : index
    %c1_14 = arith.constant 1 : index
    %20 = memref.load %arg1[%c0_13, %c1_14] : memref<4x4xf32, #tpu.memory_space<smem>>
    %21 = vector.broadcast %20 : f32 to vector<8x128xf32>
    %22 = arith.mulf %1, %21 : vector<8x128xf32>
    %c1_15 = arith.constant 1 : index
    %c1_16 = arith.constant 1 : index
    %23 = memref.load %arg1[%c1_15, %c1_16] : memref<4x4xf32, #tpu.memory_space<smem>>
    %24 = vector.broadcast %23 : f32 to vector<8x128xf32>
    %25 = arith.mulf %3, %24 : vector<8x128xf32>
    %26 = arith.addf %22, %25 : vector<8x128xf32>
    %c2_17 = arith.constant 2 : index
    %c1_18 = arith.constant 1 : index
    %27 = memref.load %arg1[%c2_17, %c1_18] : memref<4x4xf32, #tpu.memory_space<smem>>
    %28 = vector.broadcast %27 : f32 to vector<8x128xf32>
    %29 = arith.mulf %5, %28 : vector<8x128xf32>
    %30 = arith.addf %26, %29 : vector<8x128xf32>
    %c3_19 = arith.constant 3 : index
    %c1_20 = arith.constant 1 : index
    %31 = memref.load %arg1[%c3_19, %c1_20] : memref<4x4xf32, #tpu.memory_space<smem>>
    %32 = vector.broadcast %31 : f32 to vector<8x128xf32>
    %33 = arith.addf %30, %32 : vector<8x128xf32>
    %c0_21 = arith.constant 0 : index
    %c2_22 = arith.constant 2 : index
    %34 = memref.load %arg1[%c0_21, %c2_22] : memref<4x4xf32, #tpu.memory_space<smem>>
    %35 = vector.broadcast %34 : f32 to vector<8x128xf32>
    %36 = arith.mulf %1, %35 : vector<8x128xf32>
    %c1_23 = arith.constant 1 : index
    %c2_24 = arith.constant 2 : index
    %37 = memref.load %arg1[%c1_23, %c2_24] : memref<4x4xf32, #tpu.memory_space<smem>>
    %38 = vector.broadcast %37 : f32 to vector<8x128xf32>
    %39 = arith.mulf %3, %38 : vector<8x128xf32>
    %40 = arith.addf %36, %39 : vector<8x128xf32>
    %c2_25 = arith.constant 2 : index
    %c2_26 = arith.constant 2 : index
    %41 = memref.load %arg1[%c2_25, %c2_26] : memref<4x4xf32, #tpu.memory_space<smem>>
    %42 = vector.broadcast %41 : f32 to vector<8x128xf32>
    %43 = arith.mulf %5, %42 : vector<8x128xf32>
    %44 = arith.addf %40, %43 : vector<8x128xf32>
    %c3_27 = arith.constant 3 : index
    %c2_28 = arith.constant 2 : index
    %45 = memref.load %arg1[%c3_27, %c2_28] : memref<4x4xf32, #tpu.memory_space<smem>>
    %46 = vector.broadcast %45 : f32 to vector<8x128xf32>
    %47 = arith.addf %44, %46 : vector<8x128xf32>
    %48 = math.absf %47 : vector<8x128xf32>
    %cst = arith.constant 9.99999997E-7 : f32
    %49 = vector.broadcast %cst : f32 to vector<8x128xf32>
    %50 = arith.cmpf olt, %48, %49 : vector<8x128xf32>
    %cst_29 = arith.constant 9.99999997E-7 : f32
    %51 = vector.broadcast %cst_29 : f32 to vector<8x128xf32>
    %52 = arith.select %50, %51, %47 : vector<8x128xi1>, vector<8x128xf32>
    %c0_30 = arith.constant 0 : index
    %c0_31 = arith.constant 0 : index
    %53 = memref.load %arg2[%c0_30, %c0_31] : memref<4x4xf32, #tpu.memory_space<smem>>
    %54 = vector.broadcast %53 : f32 to vector<8x128xf32>
    %55 = arith.mulf %1, %54 : vector<8x128xf32>
    %c1_32 = arith.constant 1 : index
    %c0_33 = arith.constant 0 : index
    %56 = memref.load %arg2[%c1_32, %c0_33] : memref<4x4xf32, #tpu.memory_space<smem>>
    %57 = vector.broadcast %56 : f32 to vector<8x128xf32>
    %58 = arith.mulf %3, %57 : vector<8x128xf32>
    %59 = arith.addf %55, %58 : vector<8x128xf32>
    %c2_34 = arith.constant 2 : index
    %c0_35 = arith.constant 0 : index
    %60 = memref.load %arg2[%c2_34, %c0_35] : memref<4x4xf32, #tpu.memory_space<smem>>
    %61 = vector.broadcast %60 : f32 to vector<8x128xf32>
    %62 = arith.mulf %5, %61 : vector<8x128xf32>
    %63 = arith.addf %59, %62 : vector<8x128xf32>
    %c3_36 = arith.constant 3 : index
    %c0_37 = arith.constant 0 : index
    %64 = memref.load %arg2[%c3_36, %c0_37] : memref<4x4xf32, #tpu.memory_space<smem>>
    %65 = vector.broadcast %64 : f32 to vector<8x128xf32>
    %66 = arith.addf %63, %65 : vector<8x128xf32>
    %c0_38 = arith.constant 0 : index
    %c1_39 = arith.constant 1 : index
    %67 = memref.load %arg2[%c0_38, %c1_39] : memref<4x4xf32, #tpu.memory_space<smem>>
    %68 = vector.broadcast %67 : f32 to vector<8x128xf32>
    %69 = arith.mulf %1, %68 : vector<8x128xf32>
    %c1_40 = arith.constant 1 : index
    %c1_41 = arith.constant 1 : index
    %70 = memref.load %arg2[%c1_40, %c1_41] : memref<4x4xf32, #tpu.memory_space<smem>>
    %71 = vector.broadcast %70 : f32 to vector<8x128xf32>
    %72 = arith.mulf %3, %71 : vector<8x128xf32>
    %73 = arith.addf %69, %72 : vector<8x128xf32>
    %c2_42 = arith.constant 2 : index
    %c1_43 = arith.constant 1 : index
    %74 = memref.load %arg2[%c2_42, %c1_43] : memref<4x4xf32, #tpu.memory_space<smem>>
    %75 = vector.broadcast %74 : f32 to vector<8x128xf32>
    %76 = arith.mulf %5, %75 : vector<8x128xf32>
    %77 = arith.addf %73, %76 : vector<8x128xf32>
    %c3_44 = arith.constant 3 : index
    %c1_45 = arith.constant 1 : index
    %78 = memref.load %arg2[%c3_44, %c1_45] : memref<4x4xf32, #tpu.memory_space<smem>>
    %79 = vector.broadcast %78 : f32 to vector<8x128xf32>
    %80 = arith.addf %77, %79 : vector<8x128xf32>
    %c0_46 = arith.constant 0 : index
    %c3_47 = arith.constant 3 : index
    %81 = memref.load %arg2[%c0_46, %c3_47] : memref<4x4xf32, #tpu.memory_space<smem>>
    %82 = vector.broadcast %81 : f32 to vector<8x128xf32>
    %83 = arith.mulf %1, %82 : vector<8x128xf32>
    %c1_48 = arith.constant 1 : index
    %c3_49 = arith.constant 3 : index
    %84 = memref.load %arg2[%c1_48, %c3_49] : memref<4x4xf32, #tpu.memory_space<smem>>
    %85 = vector.broadcast %84 : f32 to vector<8x128xf32>
    %86 = arith.mulf %3, %85 : vector<8x128xf32>
    %87 = arith.addf %83, %86 : vector<8x128xf32>
    %c2_50 = arith.constant 2 : index
    %c3_51 = arith.constant 3 : index
    %88 = memref.load %arg2[%c2_50, %c3_51] : memref<4x4xf32, #tpu.memory_space<smem>>
    %89 = vector.broadcast %88 : f32 to vector<8x128xf32>
    %90 = arith.mulf %5, %89 : vector<8x128xf32>
    %91 = arith.addf %87, %90 : vector<8x128xf32>
    %c3_52 = arith.constant 3 : index
    %c3_53 = arith.constant 3 : index
    %92 = memref.load %arg2[%c3_52, %c3_53] : memref<4x4xf32, #tpu.memory_space<smem>>
    %93 = vector.broadcast %92 : f32 to vector<8x128xf32>
    %94 = arith.addf %91, %93 : vector<8x128xf32>
    %cst_54 = arith.constant 1.000000e-07 : f32
    %95 = vector.broadcast %cst_54 : f32 to vector<8x128xf32>
    %96 = arith.addf %94, %95 : vector<8x128xf32>
    %cst_55 = arith.constant 1.000000e+00 : f32
    %97 = vector.broadcast %cst_55 : f32 to vector<8x128xf32>
    %98 = arith.divf %97, %96 : vector<8x128xf32>
    %99 = arith.mulf %66, %98 : vector<8x128xf32>
    %cst_56 = arith.constant 1.000000e+00 : f32
    %100 = vector.broadcast %cst_56 : f32 to vector<8x128xf32>
    %101 = arith.addf %99, %100 : vector<8x128xf32>
    %cst_57 = arith.constant 1.600000e+01 : f32
    %102 = vector.broadcast %cst_57 : f32 to vector<8x128xf32>
    %103 = arith.mulf %101, %102 : vector<8x128xf32>
    %cst_58 = arith.constant 1.000000e+00 : f32
    %104 = vector.broadcast %cst_58 : f32 to vector<8x128xf32>
    %105 = arith.subf %103, %104 : vector<8x128xf32>
    %cst_59 = arith.constant 5.000000e-01 : f32
    %106 = vector.broadcast %cst_59 : f32 to vector<8x128xf32>
    %107 = arith.mulf %105, %106 : vector<8x128xf32>
    %108 = arith.mulf %80, %98 : vector<8x128xf32>
    %cst_60 = arith.constant 1.000000e+00 : f32
    %109 = vector.broadcast %cst_60 : f32 to vector<8x128xf32>
    %110 = arith.addf %108, %109 : vector<8x128xf32>
    %cst_61 = arith.constant 1.600000e+01 : f32
    %111 = vector.broadcast %cst_61 : f32 to vector<8x128xf32>
    %112 = arith.mulf %110, %111 : vector<8x128xf32>
    %cst_62 = arith.constant 1.000000e+00 : f32
    %113 = vector.broadcast %cst_62 : f32 to vector<8x128xf32>
    %114 = arith.subf %112, %113 : vector<8x128xf32>
    %cst_63 = arith.constant 5.000000e-01 : f32
    %115 = vector.broadcast %cst_63 : f32 to vector<8x128xf32>
    %116 = arith.mulf %114, %115 : vector<8x128xf32>
    %c0_64 = arith.constant 0 : index
    %c0_65 = arith.constant 0 : index
    %c0_66 = arith.constant 0 : index
    %117 = vector.load %arg5[%c0_64, %c0_65, %c0_66] : memref<3x8x128xf32, #tpu.memory_space<vmem>>, vector<1x8x128xf32>
    %118 = vector.shape_cast %117 : vector<1x8x128xf32> to vector<8x128xf32>
    %119 = math.exp %118 : vector<8x128xf32>
    %cst_67 = arith.constant 1.000000e+00 : f32
    %120 = vector.broadcast %cst_67 : f32 to vector<8x128xf32>
    %121 = arith.mulf %119, %120 : vector<8x128xf32>
    %c1_68 = arith.constant 1 : index
    %c0_69 = arith.constant 0 : index
    %c0_70 = arith.constant 0 : index
    %122 = vector.load %arg5[%c1_68, %c0_69, %c0_70] : memref<3x8x128xf32, #tpu.memory_space<vmem>>, vector<1x8x128xf32>
    %123 = vector.shape_cast %122 : vector<1x8x128xf32> to vector<8x128xf32>
    %124 = math.exp %123 : vector<8x128xf32>
    %cst_71 = arith.constant 1.000000e+00 : f32
    %125 = vector.broadcast %cst_71 : f32 to vector<8x128xf32>
    %126 = arith.mulf %124, %125 : vector<8x128xf32>
    %c2_72 = arith.constant 2 : index
    %c0_73 = arith.constant 0 : index
    %c0_74 = arith.constant 0 : index
    %127 = vector.load %arg5[%c2_72, %c0_73, %c0_74] : memref<3x8x128xf32, #tpu.memory_space<vmem>>, vector<1x8x128xf32>
    %128 = vector.shape_cast %127 : vector<1x8x128xf32> to vector<8x128xf32>
    %129 = math.exp %128 : vector<8x128xf32>
    %cst_75 = arith.constant 1.000000e+00 : f32
    %130 = vector.broadcast %cst_75 : f32 to vector<8x128xf32>
    %131 = arith.mulf %129, %130 : vector<8x128xf32>
    %c0_76 = arith.constant 0 : index
    %c0_77 = arith.constant 0 : index
    %c0_78 = arith.constant 0 : index
    %132 = vector.load %arg7[%c0_76, %c0_77, %c0_78] : memref<1x8x128xf32, #tpu.memory_space<vmem>>, vector<1x8x128xf32>
    %133 = vector.shape_cast %132 : vector<1x8x128xf32> to vector<8x128xf32>
    %cst_79 = arith.constant 0.000000e+00 : f32
    %134 = vector.broadcast %cst_79 : f32 to vector<8x128xf32>
    %135 = arith.subf %134, %133 : vector<8x128xf32>
    %136 = math.exp %135 : vector<8x128xf32>
    %cst_80 = arith.constant 1.000000e+00 : f32
    %137 = vector.broadcast %cst_80 : f32 to vector<8x128xf32>
    %138 = arith.addf %137, %136 : vector<8x128xf32>
    %cst_81 = arith.constant 1.000000e+00 : f32
    %139 = vector.broadcast %cst_81 : f32 to vector<8x128xf32>
    %140 = arith.divf %139, %138 : vector<8x128xf32>
    %c0_82 = arith.constant 0 : index
    %c0_83 = arith.constant 0 : index
    %c0_84 = arith.constant 0 : index
    %141 = vector.load %arg6[%c0_82, %c0_83, %c0_84] : memref<4x8x128xf32, #tpu.memory_space<vmem>>, vector<1x8x128xf32>
    %142 = vector.shape_cast %141 : vector<1x8x128xf32> to vector<8x128xf32>
    %c1_85 = arith.constant 1 : index
    %c0_86 = arith.constant 0 : index
    %c0_87 = arith.constant 0 : index
    %143 = vector.load %arg6[%c1_85, %c0_86, %c0_87] : memref<4x8x128xf32, #tpu.memory_space<vmem>>, vector<1x8x128xf32>
    %144 = vector.shape_cast %143 : vector<1x8x128xf32> to vector<8x128xf32>
    %c2_88 = arith.constant 2 : index
    %c0_89 = arith.constant 0 : index
    %c0_90 = arith.constant 0 : index
    %145 = vector.load %arg6[%c2_88, %c0_89, %c0_90] : memref<4x8x128xf32, #tpu.memory_space<vmem>>, vector<1x8x128xf32>
    %146 = vector.shape_cast %145 : vector<1x8x128xf32> to vector<8x128xf32>
    %c3_91 = arith.constant 3 : index
    %c0_92 = arith.constant 0 : index
    %c0_93 = arith.constant 0 : index
    %147 = vector.load %arg6[%c3_91, %c0_92, %c0_93] : memref<4x8x128xf32, #tpu.memory_space<vmem>>, vector<1x8x128xf32>
    %148 = vector.shape_cast %147 : vector<1x8x128xf32> to vector<8x128xf32>
    %149 = arith.mulf %142, %142 : vector<8x128xf32>
    %150 = arith.mulf %144, %144 : vector<8x128xf32>
    %151 = arith.addf %149, %150 : vector<8x128xf32>
    %152 = arith.mulf %146, %146 : vector<8x128xf32>
    %153 = arith.addf %151, %152 : vector<8x128xf32>
    %154 = arith.mulf %148, %148 : vector<8x128xf32>
    %155 = arith.addf %153, %154 : vector<8x128xf32>
    %cst_94 = arith.constant 9.99999996E-13 : f32
    %156 = vector.broadcast %cst_94 : f32 to vector<8x128xf32>
    %157 = arith.addf %155, %156 : vector<8x128xf32>
    %158 = math.rsqrt %157 : vector<8x128xf32>
    %159 = arith.mulf %142, %158 : vector<8x128xf32>
    %160 = arith.mulf %144, %158 : vector<8x128xf32>
    %161 = arith.mulf %146, %158 : vector<8x128xf32>
    %162 = arith.mulf %148, %158 : vector<8x128xf32>
    %163 = arith.mulf %161, %161 : vector<8x128xf32>
    %164 = arith.mulf %162, %162 : vector<8x128xf32>
    %165 = arith.addf %163, %164 : vector<8x128xf32>
    %cst_95 = arith.constant 2.000000e+00 : f32
    %166 = vector.broadcast %cst_95 : f32 to vector<8x128xf32>
    %167 = arith.mulf %166, %165 : vector<8x128xf32>
    %cst_96 = arith.constant 1.000000e+00 : f32
    %168 = vector.broadcast %cst_96 : f32 to vector<8x128xf32>
    %169 = arith.subf %168, %167 : vector<8x128xf32>
    %170 = arith.mulf %160, %161 : vector<8x128xf32>
    %171 = arith.mulf %159, %162 : vector<8x128xf32>
    %172 = arith.subf %170, %171 : vector<8x128xf32>
    %cst_97 = arith.constant 2.000000e+00 : f32
    %173 = vector.broadcast %cst_97 : f32 to vector<8x128xf32>
    %174 = arith.mulf %173, %172 : vector<8x128xf32>
    %175 = arith.mulf %160, %162 : vector<8x128xf32>
    %176 = arith.mulf %159, %161 : vector<8x128xf32>
    %177 = arith.addf %175, %176 : vector<8x128xf32>
    %cst_98 = arith.constant 2.000000e+00 : f32
    %178 = vector.broadcast %cst_98 : f32 to vector<8x128xf32>
    %179 = arith.mulf %178, %177 : vector<8x128xf32>
    %180 = arith.mulf %160, %161 : vector<8x128xf32>
    %181 = arith.mulf %159, %162 : vector<8x128xf32>
    %182 = arith.addf %180, %181 : vector<8x128xf32>
    %cst_99 = arith.constant 2.000000e+00 : f32
    %183 = vector.broadcast %cst_99 : f32 to vector<8x128xf32>
    %184 = arith.mulf %183, %182 : vector<8x128xf32>
    %185 = arith.mulf %160, %160 : vector<8x128xf32>
    %186 = arith.mulf %162, %162 : vector<8x128xf32>
    %187 = arith.addf %185, %186 : vector<8x128xf32>
    %cst_100 = arith.constant 2.000000e+00 : f32
    %188 = vector.broadcast %cst_100 : f32 to vector<8x128xf32>
    %189 = arith.mulf %188, %187 : vector<8x128xf32>
    %cst_101 = arith.constant 1.000000e+00 : f32
    %190 = vector.broadcast %cst_101 : f32 to vector<8x128xf32>
    %191 = arith.subf %190, %189 : vector<8x128xf32>
    %192 = arith.mulf %161, %162 : vector<8x128xf32>
    %193 = arith.mulf %159, %160 : vector<8x128xf32>
    %194 = arith.subf %192, %193 : vector<8x128xf32>
    %cst_102 = arith.constant 2.000000e+00 : f32
    %195 = vector.broadcast %cst_102 : f32 to vector<8x128xf32>
    %196 = arith.mulf %195, %194 : vector<8x128xf32>
    %197 = arith.mulf %160, %162 : vector<8x128xf32>
    %198 = arith.mulf %159, %161 : vector<8x128xf32>
    %199 = arith.subf %197, %198 : vector<8x128xf32>
    %cst_103 = arith.constant 2.000000e+00 : f32
    %200 = vector.broadcast %cst_103 : f32 to vector<8x128xf32>
    %201 = arith.mulf %200, %199 : vector<8x128xf32>
    %202 = arith.mulf %161, %162 : vector<8x128xf32>
    %203 = arith.mulf %159, %160 : vector<8x128xf32>
    %204 = arith.addf %202, %203 : vector<8x128xf32>
    %cst_104 = arith.constant 2.000000e+00 : f32
    %205 = vector.broadcast %cst_104 : f32 to vector<8x128xf32>
    %206 = arith.mulf %205, %204 : vector<8x128xf32>
    %207 = arith.mulf %160, %160 : vector<8x128xf32>
    %208 = arith.mulf %161, %161 : vector<8x128xf32>
    %209 = arith.addf %207, %208 : vector<8x128xf32>
    %cst_105 = arith.constant 2.000000e+00 : f32
    %210 = vector.broadcast %cst_105 : f32 to vector<8x128xf32>
    %211 = arith.mulf %210, %209 : vector<8x128xf32>
    %cst_106 = arith.constant 1.000000e+00 : f32
    %212 = vector.broadcast %cst_106 : f32 to vector<8x128xf32>
    %213 = arith.subf %212, %211 : vector<8x128xf32>
    %214 = arith.mulf %121, %121 : vector<8x128xf32>
    %215 = arith.mulf %126, %126 : vector<8x128xf32>
    %216 = arith.mulf %131, %131 : vector<8x128xf32>
    %217 = arith.mulf %169, %169 : vector<8x128xf32>
    %218 = arith.mulf %217, %214 : vector<8x128xf32>
    %219 = arith.mulf %174, %174 : vector<8x128xf32>
    %220 = arith.mulf %219, %215 : vector<8x128xf32>
    %221 = arith.addf %218, %220 : vector<8x128xf32>
    %222 = arith.mulf %179, %179 : vector<8x128xf32>
    %223 = arith.mulf %222, %216 : vector<8x128xf32>
    %224 = arith.addf %221, %223 : vector<8x128xf32>
    %225 = arith.mulf %169, %184 : vector<8x128xf32>
    %226 = arith.mulf %225, %214 : vector<8x128xf32>
    %227 = arith.mulf %174, %191 : vector<8x128xf32>
    %228 = arith.mulf %227, %215 : vector<8x128xf32>
    %229 = arith.addf %226, %228 : vector<8x128xf32>
    %230 = arith.mulf %179, %196 : vector<8x128xf32>
    %231 = arith.mulf %230, %216 : vector<8x128xf32>
    %232 = arith.addf %229, %231 : vector<8x128xf32>
    %233 = arith.mulf %169, %201 : vector<8x128xf32>
    %234 = arith.mulf %233, %214 : vector<8x128xf32>
    %235 = arith.mulf %174, %206 : vector<8x128xf32>
    %236 = arith.mulf %235, %215 : vector<8x128xf32>
    %237 = arith.addf %234, %236 : vector<8x128xf32>
    %238 = arith.mulf %179, %213 : vector<8x128xf32>
    %239 = arith.mulf %238, %216 : vector<8x128xf32>
    %240 = arith.addf %237, %239 : vector<8x128xf32>
    %241 = arith.mulf %184, %184 : vector<8x128xf32>
    %242 = arith.mulf %241, %214 : vector<8x128xf32>
    %243 = arith.mulf %191, %191 : vector<8x128xf32>
    %244 = arith.mulf %243, %215 : vector<8x128xf32>
    %245 = arith.addf %242, %244 : vector<8x128xf32>
    %246 = arith.mulf %196, %196 : vector<8x128xf32>
    %247 = arith.mulf %246, %216 : vector<8x128xf32>
    %248 = arith.addf %245, %247 : vector<8x128xf32>
    %249 = arith.mulf %184, %201 : vector<8x128xf32>
    %250 = arith.mulf %249, %214 : vector<8x128xf32>
    %251 = arith.mulf %191, %206 : vector<8x128xf32>
    %252 = arith.mulf %251, %215 : vector<8x128xf32>
    %253 = arith.addf %250, %252 : vector<8x128xf32>
    %254 = arith.mulf %196, %213 : vector<8x128xf32>
    %255 = arith.mulf %254, %216 : vector<8x128xf32>
    %256 = arith.addf %253, %255 : vector<8x128xf32>
    %257 = arith.mulf %201, %201 : vector<8x128xf32>
    %258 = arith.mulf %257, %214 : vector<8x128xf32>
    %259 = arith.mulf %206, %206 : vector<8x128xf32>
    %260 = arith.mulf %259, %215 : vector<8x128xf32>
    %261 = arith.addf %258, %260 : vector<8x128xf32>
    %262 = arith.mulf %213, %213 : vector<8x128xf32>
    %263 = arith.mulf %262, %216 : vector<8x128xf32>
    %264 = arith.addf %261, %263 : vector<8x128xf32>
    %cst_107 = arith.constant 1.000000e+00 : f32
    %265 = vector.broadcast %cst_107 : f32 to vector<8x128xf32>
    %266 = arith.divf %265, %52 : vector<8x128xf32>
    %267 = arith.mulf %19, %266 : vector<8x128xf32>
    %cst_108 = arith.constant -0.750555336 : f32
    %cst_109 = arith.constant 0.750555336 : f32
    %268 = vector.broadcast %cst_108 : f32 to vector<8x128xf32>
    %269 = arith.maximumf %268, %267 : vector<8x128xf32>
    %270 = vector.broadcast %cst_109 : f32 to vector<8x128xf32>
    %271 = arith.minimumf %270, %269 : vector<8x128xf32>
    %272 = arith.mulf %271, %47 : vector<8x128xf32>
    %273 = arith.mulf %33, %266 : vector<8x128xf32>
    %cst_110 = arith.constant -0.750555336 : f32
    %cst_111 = arith.constant 0.750555336 : f32
    %274 = vector.broadcast %cst_110 : f32 to vector<8x128xf32>
    %275 = arith.maximumf %274, %273 : vector<8x128xf32>
    %276 = vector.broadcast %cst_111 : f32 to vector<8x128xf32>
    %277 = arith.minimumf %276, %275 : vector<8x128xf32>
    %278 = arith.mulf %277, %47 : vector<8x128xf32>
    %279 = arith.mulf %266, %266 : vector<8x128xf32>
    %cst_112 = arith.constant 13.8564062 : f32
    %280 = vector.broadcast %cst_112 : f32 to vector<8x128xf32>
    %281 = arith.mulf %280, %266 : vector<8x128xf32>
    %cst_113 = arith.constant -13.8564062 : f32
    %282 = vector.broadcast %cst_113 : f32 to vector<8x128xf32>
    %283 = arith.mulf %282, %272 : vector<8x128xf32>
    %284 = arith.mulf %283, %279 : vector<8x128xf32>
    %cst_114 = arith.constant 13.8564062 : f32
    %285 = vector.broadcast %cst_114 : f32 to vector<8x128xf32>
    %286 = arith.mulf %285, %266 : vector<8x128xf32>
    %cst_115 = arith.constant -13.8564062 : f32
    %287 = vector.broadcast %cst_115 : f32 to vector<8x128xf32>
    %288 = arith.mulf %287, %278 : vector<8x128xf32>
    %289 = arith.mulf %288, %279 : vector<8x128xf32>
    %c0_116 = arith.constant 0 : index
    %c0_117 = arith.constant 0 : index
    %290 = memref.load %arg1[%c0_116, %c0_117] : memref<4x4xf32, #tpu.memory_space<smem>>
    %291 = vector.broadcast %290 : f32 to vector<8x128xf32>
    %292 = arith.mulf %281, %291 : vector<8x128xf32>
    %c0_118 = arith.constant 0 : index
    %c2_119 = arith.constant 2 : index
    %293 = memref.load %arg1[%c0_118, %c2_119] : memref<4x4xf32, #tpu.memory_space<smem>>
    %294 = vector.broadcast %293 : f32 to vector<8x128xf32>
    %295 = arith.mulf %284, %294 : vector<8x128xf32>
    %296 = arith.addf %292, %295 : vector<8x128xf32>
    %c1_120 = arith.constant 1 : index
    %c0_121 = arith.constant 0 : index
    %297 = memref.load %arg1[%c1_120, %c0_121] : memref<4x4xf32, #tpu.memory_space<smem>>
    %298 = vector.broadcast %297 : f32 to vector<8x128xf32>
    %299 = arith.mulf %281, %298 : vector<8x128xf32>
    %c1_122 = arith.constant 1 : index
    %c2_123 = arith.constant 2 : index
    %300 = memref.load %arg1[%c1_122, %c2_123] : memref<4x4xf32, #tpu.memory_space<smem>>
    %301 = vector.broadcast %300 : f32 to vector<8x128xf32>
    %302 = arith.mulf %284, %301 : vector<8x128xf32>
    %303 = arith.addf %299, %302 : vector<8x128xf32>
    %c2_124 = arith.constant 2 : index
    %c0_125 = arith.constant 0 : index
    %304 = memref.load %arg1[%c2_124, %c0_125] : memref<4x4xf32, #tpu.memory_space<smem>>
    %305 = vector.broadcast %304 : f32 to vector<8x128xf32>
    %306 = arith.mulf %281, %305 : vector<8x128xf32>
    %c2_126 = arith.constant 2 : index
    %c2_127 = arith.constant 2 : index
    %307 = memref.load %arg1[%c2_126, %c2_127] : memref<4x4xf32, #tpu.memory_space<smem>>
    %308 = vector.broadcast %307 : f32 to vector<8x128xf32>
    %309 = arith.mulf %284, %308 : vector<8x128xf32>
    %310 = arith.addf %306, %309 : vector<8x128xf32>
    %c0_128 = arith.constant 0 : index
    %c1_129 = arith.constant 1 : index
    %311 = memref.load %arg1[%c0_128, %c1_129] : memref<4x4xf32, #tpu.memory_space<smem>>
    %312 = vector.broadcast %311 : f32 to vector<8x128xf32>
    %313 = arith.mulf %286, %312 : vector<8x128xf32>
    %c0_130 = arith.constant 0 : index
    %c2_131 = arith.constant 2 : index
    %314 = memref.load %arg1[%c0_130, %c2_131] : memref<4x4xf32, #tpu.memory_space<smem>>
    %315 = vector.broadcast %314 : f32 to vector<8x128xf32>
    %316 = arith.mulf %289, %315 : vector<8x128xf32>
    %317 = arith.addf %313, %316 : vector<8x128xf32>
    %c1_132 = arith.constant 1 : index
    %c1_133 = arith.constant 1 : index
    %318 = memref.load %arg1[%c1_132, %c1_133] : memref<4x4xf32, #tpu.memory_space<smem>>
    %319 = vector.broadcast %318 : f32 to vector<8x128xf32>
    %320 = arith.mulf %286, %319 : vector<8x128xf32>
    %c1_134 = arith.constant 1 : index
    %c2_135 = arith.constant 2 : index
    %321 = memref.load %arg1[%c1_134, %c2_135] : memref<4x4xf32, #tpu.memory_space<smem>>
    %322 = vector.broadcast %321 : f32 to vector<8x128xf32>
    %323 = arith.mulf %289, %322 : vector<8x128xf32>
    %324 = arith.addf %320, %323 : vector<8x128xf32>
    %c2_136 = arith.constant 2 : index
    %c1_137 = arith.constant 1 : index
    %325 = memref.load %arg1[%c2_136, %c1_137] : memref<4x4xf32, #tpu.memory_space<smem>>
    %326 = vector.broadcast %325 : f32 to vector<8x128xf32>
    %327 = arith.mulf %286, %326 : vector<8x128xf32>
    %c2_138 = arith.constant 2 : index
    %c2_139 = arith.constant 2 : index
    %328 = memref.load %arg1[%c2_138, %c2_139] : memref<4x4xf32, #tpu.memory_space<smem>>
    %329 = vector.broadcast %328 : f32 to vector<8x128xf32>
    %330 = arith.mulf %289, %329 : vector<8x128xf32>
    %331 = arith.addf %327, %330 : vector<8x128xf32>
    %332 = arith.mulf %296, %296 : vector<8x128xf32>
    %333 = arith.mulf %332, %224 : vector<8x128xf32>
    %334 = arith.mulf %303, %303 : vector<8x128xf32>
    %335 = arith.mulf %334, %248 : vector<8x128xf32>
    %336 = arith.addf %333, %335 : vector<8x128xf32>
    %337 = arith.mulf %310, %310 : vector<8x128xf32>
    %338 = arith.mulf %337, %264 : vector<8x128xf32>
    %339 = arith.addf %336, %338 : vector<8x128xf32>
    %340 = arith.mulf %296, %303 : vector<8x128xf32>
    %341 = arith.mulf %340, %232 : vector<8x128xf32>
    %342 = arith.mulf %296, %310 : vector<8x128xf32>
    %343 = arith.mulf %342, %240 : vector<8x128xf32>
    %344 = arith.addf %341, %343 : vector<8x128xf32>
    %345 = arith.mulf %303, %310 : vector<8x128xf32>
    %346 = arith.mulf %345, %256 : vector<8x128xf32>
    %347 = arith.addf %344, %346 : vector<8x128xf32>
    %cst_140 = arith.constant 2.000000e+00 : f32
    %348 = vector.broadcast %cst_140 : f32 to vector<8x128xf32>
    %349 = arith.mulf %348, %347 : vector<8x128xf32>
    %350 = arith.addf %339, %349 : vector<8x128xf32>
    %cst_141 = arith.constant 3.000000e-01 : f32
    %351 = vector.broadcast %cst_141 : f32 to vector<8x128xf32>
    %352 = arith.addf %350, %351 : vector<8x128xf32>
    %353 = arith.mulf %296, %317 : vector<8x128xf32>
    %354 = arith.mulf %353, %224 : vector<8x128xf32>
    %355 = arith.mulf %303, %324 : vector<8x128xf32>
    %356 = arith.mulf %355, %248 : vector<8x128xf32>
    %357 = arith.addf %354, %356 : vector<8x128xf32>
    %358 = arith.mulf %310, %331 : vector<8x128xf32>
    %359 = arith.mulf %358, %264 : vector<8x128xf32>
    %360 = arith.addf %357, %359 : vector<8x128xf32>
    %361 = arith.mulf %296, %324 : vector<8x128xf32>
    %362 = arith.mulf %303, %317 : vector<8x128xf32>
    %363 = arith.addf %361, %362 : vector<8x128xf32>
    %364 = arith.mulf %363, %232 : vector<8x128xf32>
    %365 = arith.addf %360, %364 : vector<8x128xf32>
    %366 = arith.mulf %296, %331 : vector<8x128xf32>
    %367 = arith.mulf %310, %317 : vector<8x128xf32>
    %368 = arith.addf %366, %367 : vector<8x128xf32>
    %369 = arith.mulf %368, %240 : vector<8x128xf32>
    %370 = arith.addf %365, %369 : vector<8x128xf32>
    %371 = arith.mulf %303, %331 : vector<8x128xf32>
    %372 = arith.mulf %310, %324 : vector<8x128xf32>
    %373 = arith.addf %371, %372 : vector<8x128xf32>
    %374 = arith.mulf %373, %256 : vector<8x128xf32>
    %375 = arith.addf %370, %374 : vector<8x128xf32>
    %376 = arith.mulf %317, %317 : vector<8x128xf32>
    %377 = arith.mulf %376, %224 : vector<8x128xf32>
    %378 = arith.mulf %324, %324 : vector<8x128xf32>
    %379 = arith.mulf %378, %248 : vector<8x128xf32>
    %380 = arith.addf %377, %379 : vector<8x128xf32>
    %381 = arith.mulf %331, %331 : vector<8x128xf32>
    %382 = arith.mulf %381, %264 : vector<8x128xf32>
    %383 = arith.addf %380, %382 : vector<8x128xf32>
    %384 = arith.mulf %317, %324 : vector<8x128xf32>
    %385 = arith.mulf %384, %232 : vector<8x128xf32>
    %386 = arith.mulf %317, %331 : vector<8x128xf32>
    %387 = arith.mulf %386, %240 : vector<8x128xf32>
    %388 = arith.addf %385, %387 : vector<8x128xf32>
    %389 = arith.mulf %324, %331 : vector<8x128xf32>
    %390 = arith.mulf %389, %256 : vector<8x128xf32>
    %391 = arith.addf %388, %390 : vector<8x128xf32>
    %cst_142 = arith.constant 2.000000e+00 : f32
    %392 = vector.broadcast %cst_142 : f32 to vector<8x128xf32>
    %393 = arith.mulf %392, %391 : vector<8x128xf32>
    %394 = arith.addf %383, %393 : vector<8x128xf32>
    %cst_143 = arith.constant 3.000000e-01 : f32
    %395 = vector.broadcast %cst_143 : f32 to vector<8x128xf32>
    %396 = arith.addf %394, %395 : vector<8x128xf32>
    %397 = arith.mulf %352, %396 : vector<8x128xf32>
    %398 = arith.mulf %375, %375 : vector<8x128xf32>
    %399 = arith.subf %397, %398 : vector<8x128xf32>
    %cst_144 = arith.constant 0.000000e+00 : f32
    %400 = vector.broadcast %cst_144 : f32 to vector<8x128xf32>
    %401 = arith.cmpf one, %399, %400 : vector<8x128xf32>
    %cst_145 = arith.constant 1.000000e+00 : f32
    %402 = vector.broadcast %cst_145 : f32 to vector<8x128xf32>
    %403 = arith.select %401, %399, %402 : vector<8x128xi1>, vector<8x128xf32>
    %cst_146 = arith.constant 1.000000e+00 : f32
    %404 = vector.broadcast %cst_146 : f32 to vector<8x128xf32>
    %405 = arith.divf %404, %403 : vector<8x128xf32>
    %406 = arith.mulf %396, %405 : vector<8x128xf32>
    %cst_147 = arith.constant 0.000000e+00 : f32
    %407 = vector.broadcast %cst_147 : f32 to vector<8x128xf32>
    %408 = arith.subf %407, %375 : vector<8x128xf32>
    %409 = arith.mulf %408, %405 : vector<8x128xf32>
    %410 = arith.mulf %352, %405 : vector<8x128xf32>
    %411 = arith.addf %352, %396 : vector<8x128xf32>
    %cst_148 = arith.constant 5.000000e-01 : f32
    %412 = vector.broadcast %cst_148 : f32 to vector<8x128xf32>
    %413 = arith.mulf %412, %411 : vector<8x128xf32>
    %414 = arith.mulf %413, %413 : vector<8x128xf32>
    %415 = arith.subf %414, %399 : vector<8x128xf32>
    %cst_149 = arith.constant 1.000000e-01 : f32
    %416 = vector.broadcast %cst_149 : f32 to vector<8x128xf32>
    %417 = arith.maximumf %416, %415 : vector<8x128xf32>
    %418 = math.sqrt %417 : vector<8x128xf32>
    %419 = arith.addf %413, %418 : vector<8x128xf32>
    %420 = math.sqrt %419 : vector<8x128xf32>
    %cst_150 = arith.constant 3.000000e+00 : f32
    %421 = vector.broadcast %cst_150 : f32 to vector<8x128xf32>
    %422 = arith.mulf %421, %420 : vector<8x128xf32>
    %423 = math.ceil %422 : vector<8x128xf32>
    %c0_151 = arith.constant 0 : index
    %424 = memref.load %arg3[%c0_151] : memref<3xf32, #tpu.memory_space<smem>>
    %425 = vector.broadcast %424 : f32 to vector<8x128xf32>
    %426 = arith.subf %1, %425 : vector<8x128xf32>
    %c1_152 = arith.constant 1 : index
    %427 = memref.load %arg3[%c1_152] : memref<3xf32, #tpu.memory_space<smem>>
    %428 = vector.broadcast %427 : f32 to vector<8x128xf32>
    %429 = arith.subf %3, %428 : vector<8x128xf32>
    %c2_153 = arith.constant 2 : index
    %430 = memref.load %arg3[%c2_153] : memref<3xf32, #tpu.memory_space<smem>>
    %431 = vector.broadcast %430 : f32 to vector<8x128xf32>
    %432 = arith.subf %5, %431 : vector<8x128xf32>
    %433 = arith.mulf %426, %426 : vector<8x128xf32>
    %434 = arith.mulf %429, %429 : vector<8x128xf32>
    %435 = arith.addf %433, %434 : vector<8x128xf32>
    %436 = arith.mulf %432, %432 : vector<8x128xf32>
    %437 = arith.addf %435, %436 : vector<8x128xf32>
    %cst_154 = arith.constant 9.99999996E-13 : f32
    %438 = vector.broadcast %cst_154 : f32 to vector<8x128xf32>
    %439 = arith.addf %437, %438 : vector<8x128xf32>
    %440 = math.rsqrt %439 : vector<8x128xf32>
    %cst_155 = arith.constant 0.488602519 : f32
    %441 = vector.broadcast %cst_155 : f32 to vector<8x128xf32>
    %442 = arith.mulf %441, %426 : vector<8x128xf32>
    %443 = arith.mulf %442, %440 : vector<8x128xf32>
    %cst_156 = arith.constant 0.488602519 : f32
    %444 = vector.broadcast %cst_156 : f32 to vector<8x128xf32>
    %445 = arith.mulf %444, %429 : vector<8x128xf32>
    %446 = arith.mulf %445, %440 : vector<8x128xf32>
    %cst_157 = arith.constant 0.488602519 : f32
    %447 = vector.broadcast %cst_157 : f32 to vector<8x128xf32>
    %448 = arith.mulf %447, %432 : vector<8x128xf32>
    %449 = arith.mulf %448, %440 : vector<8x128xf32>
    %c0_158 = arith.constant 0 : index
    %c0_159 = arith.constant 0 : index
    %c0_160 = arith.constant 0 : index
    %450 = vector.load %arg8[%c0_158, %c0_159, %c0_160] : memref<12x8x128xf32, #tpu.memory_space<vmem>>, vector<1x8x128xf32>
    %451 = vector.shape_cast %450 : vector<1x8x128xf32> to vector<8x128xf32>
    %cst_161 = arith.constant 0.282094806 : f32
    %452 = vector.broadcast %cst_161 : f32 to vector<8x128xf32>
    %453 = arith.mulf %452, %451 : vector<8x128xf32>
    %c3_162 = arith.constant 3 : index
    %c0_163 = arith.constant 0 : index
    %c0_164 = arith.constant 0 : index
    %454 = vector.load %arg8[%c3_162, %c0_163, %c0_164] : memref<12x8x128xf32, #tpu.memory_space<vmem>>, vector<1x8x128xf32>
    %455 = vector.shape_cast %454 : vector<1x8x128xf32> to vector<8x128xf32>
    %456 = arith.mulf %446, %455 : vector<8x128xf32>
    %457 = arith.subf %453, %456 : vector<8x128xf32>
    %c6 = arith.constant 6 : index
    %c0_165 = arith.constant 0 : index
    %c0_166 = arith.constant 0 : index
    %458 = vector.load %arg8[%c6, %c0_165, %c0_166] : memref<12x8x128xf32, #tpu.memory_space<vmem>>, vector<1x8x128xf32>
    %459 = vector.shape_cast %458 : vector<1x8x128xf32> to vector<8x128xf32>
    %460 = arith.mulf %449, %459 : vector<8x128xf32>
    %461 = arith.addf %457, %460 : vector<8x128xf32>
    %c9 = arith.constant 9 : index
    %c0_167 = arith.constant 0 : index
    %c0_168 = arith.constant 0 : index
    %462 = vector.load %arg8[%c9, %c0_167, %c0_168] : memref<12x8x128xf32, #tpu.memory_space<vmem>>, vector<1x8x128xf32>
    %463 = vector.shape_cast %462 : vector<1x8x128xf32> to vector<8x128xf32>
    %464 = arith.mulf %443, %463 : vector<8x128xf32>
    %465 = arith.subf %461, %464 : vector<8x128xf32>
    %cst_169 = arith.constant 5.000000e-01 : f32
    %466 = vector.broadcast %cst_169 : f32 to vector<8x128xf32>
    %467 = arith.addf %465, %466 : vector<8x128xf32>
    %cst_170 = arith.constant 0.000000e+00 : f32
    %468 = vector.broadcast %cst_170 : f32 to vector<8x128xf32>
    %469 = arith.maximumf %467, %468 : vector<8x128xf32>
    %c1_171 = arith.constant 1 : index
    %c0_172 = arith.constant 0 : index
    %c0_173 = arith.constant 0 : index
    %470 = vector.load %arg8[%c1_171, %c0_172, %c0_173] : memref<12x8x128xf32, #tpu.memory_space<vmem>>, vector<1x8x128xf32>
    %471 = vector.shape_cast %470 : vector<1x8x128xf32> to vector<8x128xf32>
    %cst_174 = arith.constant 0.282094806 : f32
    %472 = vector.broadcast %cst_174 : f32 to vector<8x128xf32>
    %473 = arith.mulf %472, %471 : vector<8x128xf32>
    %c4 = arith.constant 4 : index
    %c0_175 = arith.constant 0 : index
    %c0_176 = arith.constant 0 : index
    %474 = vector.load %arg8[%c4, %c0_175, %c0_176] : memref<12x8x128xf32, #tpu.memory_space<vmem>>, vector<1x8x128xf32>
    %475 = vector.shape_cast %474 : vector<1x8x128xf32> to vector<8x128xf32>
    %476 = arith.mulf %446, %475 : vector<8x128xf32>
    %477 = arith.subf %473, %476 : vector<8x128xf32>
    %c7 = arith.constant 7 : index
    %c0_177 = arith.constant 0 : index
    %c0_178 = arith.constant 0 : index
    %478 = vector.load %arg8[%c7, %c0_177, %c0_178] : memref<12x8x128xf32, #tpu.memory_space<vmem>>, vector<1x8x128xf32>
    %479 = vector.shape_cast %478 : vector<1x8x128xf32> to vector<8x128xf32>
    %480 = arith.mulf %449, %479 : vector<8x128xf32>
    %481 = arith.addf %477, %480 : vector<8x128xf32>
    %c10 = arith.constant 10 : index
    %c0_179 = arith.constant 0 : index
    %c0_180 = arith.constant 0 : index
    %482 = vector.load %arg8[%c10, %c0_179, %c0_180] : memref<12x8x128xf32, #tpu.memory_space<vmem>>, vector<1x8x128xf32>
    %483 = vector.shape_cast %482 : vector<1x8x128xf32> to vector<8x128xf32>
    %484 = arith.mulf %443, %483 : vector<8x128xf32>
    %485 = arith.subf %481, %484 : vector<8x128xf32>
    %cst_181 = arith.constant 5.000000e-01 : f32
    %486 = vector.broadcast %cst_181 : f32 to vector<8x128xf32>
    %487 = arith.addf %485, %486 : vector<8x128xf32>
    %cst_182 = arith.constant 0.000000e+00 : f32
    %488 = vector.broadcast %cst_182 : f32 to vector<8x128xf32>
    %489 = arith.maximumf %487, %488 : vector<8x128xf32>
    %c2_183 = arith.constant 2 : index
    %c0_184 = arith.constant 0 : index
    %c0_185 = arith.constant 0 : index
    %490 = vector.load %arg8[%c2_183, %c0_184, %c0_185] : memref<12x8x128xf32, #tpu.memory_space<vmem>>, vector<1x8x128xf32>
    %491 = vector.shape_cast %490 : vector<1x8x128xf32> to vector<8x128xf32>
    %cst_186 = arith.constant 0.282094806 : f32
    %492 = vector.broadcast %cst_186 : f32 to vector<8x128xf32>
    %493 = arith.mulf %492, %491 : vector<8x128xf32>
    %c5 = arith.constant 5 : index
    %c0_187 = arith.constant 0 : index
    %c0_188 = arith.constant 0 : index
    %494 = vector.load %arg8[%c5, %c0_187, %c0_188] : memref<12x8x128xf32, #tpu.memory_space<vmem>>, vector<1x8x128xf32>
    %495 = vector.shape_cast %494 : vector<1x8x128xf32> to vector<8x128xf32>
    %496 = arith.mulf %446, %495 : vector<8x128xf32>
    %497 = arith.subf %493, %496 : vector<8x128xf32>
    %c8 = arith.constant 8 : index
    %c0_189 = arith.constant 0 : index
    %c0_190 = arith.constant 0 : index
    %498 = vector.load %arg8[%c8, %c0_189, %c0_190] : memref<12x8x128xf32, #tpu.memory_space<vmem>>, vector<1x8x128xf32>
    %499 = vector.shape_cast %498 : vector<1x8x128xf32> to vector<8x128xf32>
    %500 = arith.mulf %449, %499 : vector<8x128xf32>
    %501 = arith.addf %497, %500 : vector<8x128xf32>
    %c11 = arith.constant 11 : index
    %c0_191 = arith.constant 0 : index
    %c0_192 = arith.constant 0 : index
    %502 = vector.load %arg8[%c11, %c0_191, %c0_192] : memref<12x8x128xf32, #tpu.memory_space<vmem>>, vector<1x8x128xf32>
    %503 = vector.shape_cast %502 : vector<1x8x128xf32> to vector<8x128xf32>
    %504 = arith.mulf %443, %503 : vector<8x128xf32>
    %505 = arith.subf %501, %504 : vector<8x128xf32>
    %cst_193 = arith.constant 5.000000e-01 : f32
    %506 = vector.broadcast %cst_193 : f32 to vector<8x128xf32>
    %507 = arith.addf %505, %506 : vector<8x128xf32>
    %cst_194 = arith.constant 0.000000e+00 : f32
    %508 = vector.broadcast %cst_194 : f32 to vector<8x128xf32>
    %509 = arith.maximumf %507, %508 : vector<8x128xf32>
    %cst_195 = arith.constant 2.000000e-01 : f32
    %510 = vector.broadcast %cst_195 : f32 to vector<8x128xf32>
    %511 = arith.cmpf ogt, %47, %510 : vector<8x128xf32>
    %512 = arith.andi %511, %401 : vector<8x128xi1>
    %cst_196 = arith.constant 0.000000e+00 : f32
    %513 = vector.broadcast %cst_196 : f32 to vector<8x128xf32>
    %514 = arith.select %512, %140, %513 : vector<8x128xi1>, vector<8x128xf32>
    %cst_197 = arith.constant 0.000000e+00 : f32
    %515 = vector.broadcast %cst_197 : f32 to vector<8x128xf32>
    %516 = arith.select %512, %423, %515 : vector<8x128xi1>, vector<8x128xf32>
    %c0_198 = arith.constant 0 : index
    %c0_199 = arith.constant 0 : index
    %c0_200 = arith.constant 0 : index
    %517 = vector.load %arg9[%c0_198, %c0_199, %c0_200] : memref<11x8x128xf32, #tpu.memory_space<vmem>>, vector<1x8x128xf32>
    %518 = vector.shape_cast %517 : vector<1x8x128xf32> to vector<8x128xf32>
    %519 = vector.shape_cast %107 : vector<8x128xf32> to vector<1x8x128xf32>
    tpu.vector_store %arg9[%c0_198, %c0_199, %c0_200], %519 {strides = array<i32>} : memref<11x8x128xf32, #tpu.memory_space<vmem>>, vector<1x8x128xf32>,
    %c1_201 = arith.constant 1 : index
    %c0_202 = arith.constant 0 : index
    %c0_203 = arith.constant 0 : index
    %520 = vector.load %arg9[%c1_201, %c0_202, %c0_203] : memref<11x8x128xf32, #tpu.memory_space<vmem>>, vector<1x8x128xf32>
    %521 = vector.shape_cast %520 : vector<1x8x128xf32> to vector<8x128xf32>
    %522 = vector.shape_cast %116 : vector<8x128xf32> to vector<1x8x128xf32>
    tpu.vector_store %arg9[%c1_201, %c0_202, %c0_203], %522 {strides = array<i32>} : memref<11x8x128xf32, #tpu.memory_space<vmem>>, vector<1x8x128xf32>,
    %cst_204 = arith.constant -5.000000e-01 : f32
    %523 = vector.broadcast %cst_204 : f32 to vector<8x128xf32>
    %524 = arith.mulf %523, %406 : vector<8x128xf32>
    %c2_205 = arith.constant 2 : index
    %c0_206 = arith.constant 0 : index
    %c0_207 = arith.constant 0 : index
    %525 = vector.load %arg9[%c2_205, %c0_206, %c0_207] : memref<11x8x128xf32, #tpu.memory_space<vmem>>, vector<1x8x128xf32>
    %526 = vector.shape_cast %525 : vector<1x8x128xf32> to vector<8x128xf32>
    %527 = vector.shape_cast %524 : vector<8x128xf32> to vector<1x8x128xf32>
    tpu.vector_store %arg9[%c2_205, %c0_206, %c0_207], %527 {strides = array<i32>} : memref<11x8x128xf32, #tpu.memory_space<vmem>>, vector<1x8x128xf32>,
    %cst_208 = arith.constant 0.000000e+00 : f32
    %528 = vector.broadcast %cst_208 : f32 to vector<8x128xf32>
    %529 = arith.subf %528, %409 : vector<8x128xf32>
    %c3_209 = arith.constant 3 : index
    %c0_210 = arith.constant 0 : index
    %c0_211 = arith.constant 0 : index
    %530 = vector.load %arg9[%c3_209, %c0_210, %c0_211] : memref<11x8x128xf32, #tpu.memory_space<vmem>>, vector<1x8x128xf32>
    %531 = vector.shape_cast %530 : vector<1x8x128xf32> to vector<8x128xf32>
    %532 = vector.shape_cast %529 : vector<8x128xf32> to vector<1x8x128xf32>
    tpu.vector_store %arg9[%c3_209, %c0_210, %c0_211], %532 {strides = array<i32>} : memref<11x8x128xf32, #tpu.memory_space<vmem>>, vector<1x8x128xf32>,
    %cst_212 = arith.constant -5.000000e-01 : f32
    %533 = vector.broadcast %cst_212 : f32 to vector<8x128xf32>
    %534 = arith.mulf %533, %410 : vector<8x128xf32>
    %c4_213 = arith.constant 4 : index
    %c0_214 = arith.constant 0 : index
    %c0_215 = arith.constant 0 : index
    %535 = vector.load %arg9[%c4_213, %c0_214, %c0_215] : memref<11x8x128xf32, #tpu.memory_space<vmem>>, vector<1x8x128xf32>
    %536 = vector.shape_cast %535 : vector<1x8x128xf32> to vector<8x128xf32>
    %537 = vector.shape_cast %534 : vector<8x128xf32> to vector<1x8x128xf32>
    tpu.vector_store %arg9[%c4_213, %c0_214, %c0_215], %537 {strides = array<i32>} : memref<11x8x128xf32, #tpu.memory_space<vmem>>, vector<1x8x128xf32>,
    %c5_216 = arith.constant 5 : index
    %c0_217 = arith.constant 0 : index
    %c0_218 = arith.constant 0 : index
    %538 = vector.load %arg9[%c5_216, %c0_217, %c0_218] : memref<11x8x128xf32, #tpu.memory_space<vmem>>, vector<1x8x128xf32>
    %539 = vector.shape_cast %538 : vector<1x8x128xf32> to vector<8x128xf32>
    %540 = vector.shape_cast %514 : vector<8x128xf32> to vector<1x8x128xf32>
    tpu.vector_store %arg9[%c5_216, %c0_217, %c0_218], %540 {strides = array<i32>} : memref<11x8x128xf32, #tpu.memory_space<vmem>>, vector<1x8x128xf32>,
    %c6_219 = arith.constant 6 : index
    %c0_220 = arith.constant 0 : index
    %c0_221 = arith.constant 0 : index
    %541 = vector.load %arg9[%c6_219, %c0_220, %c0_221] : memref<11x8x128xf32, #tpu.memory_space<vmem>>, vector<1x8x128xf32>
    %542 = vector.shape_cast %541 : vector<1x8x128xf32> to vector<8x128xf32>
    %543 = vector.shape_cast %469 : vector<8x128xf32> to vector<1x8x128xf32>
    tpu.vector_store %arg9[%c6_219, %c0_220, %c0_221], %543 {strides = array<i32>} : memref<11x8x128xf32, #tpu.memory_space<vmem>>, vector<1x8x128xf32>,
    %c7_222 = arith.constant 7 : index
    %c0_223 = arith.constant 0 : index
    %c0_224 = arith.constant 0 : index
    %544 = vector.load %arg9[%c7_222, %c0_223, %c0_224] : memref<11x8x128xf32, #tpu.memory_space<vmem>>, vector<1x8x128xf32>
    %545 = vector.shape_cast %544 : vector<1x8x128xf32> to vector<8x128xf32>
    %546 = vector.shape_cast %489 : vector<8x128xf32> to vector<1x8x128xf32>
    tpu.vector_store %arg9[%c7_222, %c0_223, %c0_224], %546 {strides = array<i32>} : memref<11x8x128xf32, #tpu.memory_space<vmem>>, vector<1x8x128xf32>,
    %c8_225 = arith.constant 8 : index
    %c0_226 = arith.constant 0 : index
    %c0_227 = arith.constant 0 : index
    %547 = vector.load %arg9[%c8_225, %c0_226, %c0_227] : memref<11x8x128xf32, #tpu.memory_space<vmem>>, vector<1x8x128xf32>
    %548 = vector.shape_cast %547 : vector<1x8x128xf32> to vector<8x128xf32>
    %549 = vector.shape_cast %509 : vector<8x128xf32> to vector<1x8x128xf32>
    tpu.vector_store %arg9[%c8_225, %c0_226, %c0_227], %549 {strides = array<i32>} : memref<11x8x128xf32, #tpu.memory_space<vmem>>, vector<1x8x128xf32>,
    %c9_228 = arith.constant 9 : index
    %c0_229 = arith.constant 0 : index
    %c0_230 = arith.constant 0 : index
    %550 = vector.load %arg9[%c9_228, %c0_229, %c0_230] : memref<11x8x128xf32, #tpu.memory_space<vmem>>, vector<1x8x128xf32>
    %551 = vector.shape_cast %550 : vector<1x8x128xf32> to vector<8x128xf32>
    %552 = vector.shape_cast %47 : vector<8x128xf32> to vector<1x8x128xf32>
    tpu.vector_store %arg9[%c9_228, %c0_229, %c0_230], %552 {strides = array<i32>} : memref<11x8x128xf32, #tpu.memory_space<vmem>>, vector<1x8x128xf32>,
    %c10_231 = arith.constant 10 : index
    %c0_232 = arith.constant 0 : index
    %c0_233 = arith.constant 0 : index
    %553 = vector.load %arg9[%c10_231, %c0_232, %c0_233] : memref<11x8x128xf32, #tpu.memory_space<vmem>>, vector<1x8x128xf32>
    %554 = vector.shape_cast %553 : vector<1x8x128xf32> to vector<8x128xf32>
    %555 = vector.shape_cast %516 : vector<8x128xf32> to vector<1x8x128xf32>
    tpu.vector_store %arg9[%c10_231, %c0_232, %c0_233], %555 {strides = array<i32>} : memref<11x8x128xf32, #tpu.memory_space<vmem>>, vector<1x8x128xf32>,
    return
  }
  func.func @transform_0(%arg0: i32) -> (i32, i32) {
    %c0_i32 = arith.constant 0 : i32
    %c0_i32_0 = arith.constant 0 : i32
    %c0_i32_1 = arith.constant 0 : i32
    return %c0_i32, %c0_i32_0 : i32, i32
  }
  func.func @transform_1(%arg0: i32) -> (i32, i32) {
    %c0_i32 = arith.constant 0 : i32
    %c0_i32_0 = arith.constant 0 : i32
    %c0_i32_1 = arith.constant 0 : i32
    return %c0_i32, %c0_i32_0 : i32, i32
  }
  func.func @transform_2(%arg0: i32) -> i32 {
    %c0_i32 = arith.constant 0 : i32
    %c0_i32_0 = arith.constant 0 : i32
    return %c0_i32 : i32
  }
  func.func @transform_3(%arg0: i32) -> (i32, i32, i32) {
    %c0_i32 = arith.constant 0 : i32
    %c0_i32_0 = arith.constant 0 : i32
    %c0_i32_1 = arith.constant 0 : i32
    return %c0_i32, %arg0, %c0_i32_0 : i32, i32, i32
  }
  func.func @transform_4(%arg0: i32) -> (i32, i32, i32) {
    %c0_i32 = arith.constant 0 : i32
    %c0_i32_0 = arith.constant 0 : i32
    %c0_i32_1 = arith.constant 0 : i32
    return %c0_i32, %arg0, %c0_i32_0 : i32, i32, i32
  }
  func.func @transform_5(%arg0: i32) -> (i32, i32, i32) {
    %c0_i32 = arith.constant 0 : i32
    %c0_i32_0 = arith.constant 0 : i32
    %c0_i32_1 = arith.constant 0 : i32
    return %c0_i32, %arg0, %c0_i32_0 : i32, i32, i32
  }
  func.func @transform_6(%arg0: i32) -> (i32, i32, i32) {
    %c0_i32 = arith.constant 0 : i32
    %c0_i32_0 = arith.constant 0 : i32
    %c0_i32_1 = arith.constant 0 : i32
    return %c0_i32, %arg0, %c0_i32_0 : i32, i32, i32
  }
  func.func @transform_7(%arg0: i32) -> (i32, i32, i32) {
    %c0_i32 = arith.constant 0 : i32
    %c0_i32_0 = arith.constant 0 : i32
    %c0_i32_1 = arith.constant 0 : i32
    return %c0_i32, %arg0, %c0_i32_0 : i32, i32, i32
  }
  func.func @transform_8(%arg0: i32) -> (i32, i32, i32) {
    %c0_i32 = arith.constant 0 : i32
    %c0_i32_0 = arith.constant 0 : i32
    %c0_i32_1 = arith.constant 0 : i32
    return %c0_i32, %arg0, %c0_i32_0 : i32, i32, i32
  }
}

</mosaic_0001>

<bundles_post_ra>
// kernel: tpu_custom_call.1
= control target key start
LH: loop header
LB: loop body
LE: loop exit
PB: predicated region body
PF: predicated region fallthrough
CT: control target
= control target key end

     0   :  { %s2387_s0 = inlined_call_operand.hbm [shape: f32[4,4], index: 0, kind: input, shape index: {}]   ;;  %s2388_s1 = inlined_call_operand.hbm [shape: f32[4,4], index: 1, kind: input, shape index: {}]   ;;  %s2389_s2 = inlined_call_operand.vmem [shape: f32[3], index: 2, kind: input, shape index: {}]   ;;  %s2390_s3 = inlined_call_operand.hbm [shape: f32[3,16,128], index: 3, kind: input, shape index: {}]   ;;  %s2391_s4 = inlined_call_operand.hbm [shape: f32[3,16,128], index: 4, kind: input, shape index: {}]   ;;  %s2392_s5 = inlined_call_operand.hbm [shape: f32[4,16,128], index: 5, kind: input, shape index: {}]   ;;  %s2393_s6 = inlined_call_operand.vmem [shape: f32[1,16,128], index: 6, kind: input, shape index: {}]   ;;  %s2394_s7 = inlined_call_operand.hbm [shape: f32[12,16,128], index: 7, kind: input, shape index: {}]   ;;  %s2395_s8 = inlined_call_operand.hbm [shape: f32[11,16,128], index: 8, kind: output, shape index: {}]  }
   0x1   :  { %2415 = sst [smem:[#allocation30_spill]] %s2387_s0 }
   0x2   :  { %2416 = sst [smem:[#allocation31_spill]] %s2389_s2 }
   0x3   :  { %2417 = sst [smem:[#allocation32_spill]] %s2391_s4 }
   0x4   :  { %2418 = sst [smem:[#allocation33_spill]] %s2395_s8 }
   0x5   :  { %13 = vsyncpa [#allocation5], 0 }
   0x6   :  { %14 = vsyncpa [#allocation8], 0 }
   0x7   :  { %15 = vsyncpa [#allocation6], 0 }
   0x8   :  { %16 = vsyncpa [#allocation3], 0 }
   0x9   :  { %18 = vsyncpa [#allocation3 + $0x1], 0 }
   0xa   :  { %19 = vsyncpa [#allocation12], 0 }
   0xb   :  { %21 = vsyncpa [#allocation12 + $0x1], 0 }
   0xc   :  { %22 = vsyncpa [#allocation15], 0 }
   0xd   :  { %24 = vsyncpa [#allocation15 + $0x1], 0 }
   0xe   :  { %25 = vsyncpa [#allocation4], 0 }
   0xf   :  { %27 = vsyncpa [#allocation4 + $0x1], 0  ;;  %s1652_s27 = smov 0   ;;  %s1654_s28 = smov 0  }
  0x10   :  { %s1656_s29 = smov 0   ;;  %s1658_s30 = smov 0  }
  0x11 LB: > { %2419 = sst [smem:[#allocation24_spill]] %s1579_s27  ;;  %s1673_s9 = sadd.s32 1, %s1591_s30   ;;  %s1591_s30 = sphi %s1658_s30, %s2460_s30   ;;  %s1587_s29 = sphi %s1656_s29, %s2462_s29   ;;  %s1583_s28 = sphi %s1654_s28, %s2464_s28   ;;  %s1579_s27 = sphi %s1652_s27, %s2463_s27  }
  0x12   : > { %2420 = sst [smem:[#allocation25_spill]] %s1587_s29  ;;  %s103_s10 = sadd.s32 1, %s1587_s29 }
  0x13   : > { %2421 = sst [smem:[#allocation26_spill]] %s1591_s30  ;;  %s100_s11 = ssub.s32 %s1591_s30, %s1673_s9 }
  0x14   : > { %2422 = sst [smem:[#allocation27_spill]] %s1673_s9  ;;  %p2396_p0 = scmp.ne.s32.totalorder %s1587_s29, %s1583_s28 }
  0x15   : > { %p101_p1 = scmp.eq.s32.totalorder %s100_s11, 0  ;;  %p111_p2 = scmp.eq.s32.totalorder %s1591_s30, 0 }
  0x16   : > { %p1274_p4 = scmp.lt.s32.totalorder %s1591_s30, 2  ;;  %s1690_s13 = sand.u32 1, %s1587_s29  }
  0x17   : > { %s1684_s12 = scalar_select %p101_p1, %s1587_s29, %s103_s10  }
  0x18   : > { %p112_p5 = por %p111_p2, %p2396_p0  ;;  %s2403_s14 = smul.u32 24, %s1690_s13 }
  0x19   : > { %2423 = sst [smem:[#allocation28_spill]] %s1684_s12  ;;  %s1694_s15 = sshll.u32 %s1591_s30, 7 }
  0x1a   : > { %p1696_p6 = pnand %p1274_p4, %p112_p5  ;;  %s319_s17 = sand.u32 1, %s1591_s30  }
  0x1b   : > { %s2425_s4 = sld [smem:[#allocation32_spill]]  ;;  %s323_s21 = scalar_lea.vmem [#allocation11], %s2403_s14 }
  0x1c   : > { %s329_s22 = sshll.u32 %s323_s21, 4  ;;  %s1711_s23 = scalar_lea.sflag [#allocation12], %s319_s17  ;;  %s1709_s22 = int_to_ptr.vmem [resolvable:$true] %s329_s22 }
  0x1d   : > { %p1717_p8 = pneg %p1696_p6 }
  0x21   : > { %s1705_s20 = scalar_lea.hbm %s2425_s4, %s1694_s15  ;;  %s1349_s11 = scalar_lea.hbm %s2425_s4, 768 }
  0x22   : > { %s1344_s24 = scalar_lea.hbm %s1705_s20, 384  ;;  %p1350_p11 = scmp.lt.u32.totalorder %s1705_s20, %s2425_s4 }
  0x23   : > { %p1345_p7 = scmp.ne.s32.totalorder %s1705_s20, %s1344_s24  ;;  %p1351_p12 = scmp.lt.u32.totalorder %s1349_s11, %s1344_s24 }
  0x24   : > { %p1353_p1 = scmp.lt.u32.totalorder %s1344_s24, %s1705_s20 }
  0x25   : > { %p1347_p9 = pnand %p1717_p8, %p1345_p7  ;;  %p1352_p13 = por %p1351_p12, %p1350_p11 }
  0x27   : > { %p1348_p10 = pneg %p1347_p9  ;;  %p1354_p2 = por %p1353_p1, %p1352_p13 }
  0x29   : > { %p1355_p4 = pnand %p1354_p2, %p1348_p10 }
  0x2b   : > { %1358 = shalt.err (!%p1355_p4)
}
  0x2c   : > { %s1359_s17 = scalar_lea.vmem %s1709_s22, 384  ;;  %s1593_s21 = smov [#allocation11]  }
  0x2d   : > { %p1360_p5 = scmp.ne.s32.totalorder %s1709_s22, %s1359_s17  ;;  %s1364_s26 = sshll.u32 %s1593_s21, 4  ;;  %s1365_s26 = int_to_ptr.vmem [resolvable:$false] %s1364_s26 }
  0x2e   : > { %s1366_s10 = scalar_lea.vmem %s1365_s26, 768  ;;  %p1367_p3 = scmp.lt.s32.totalorder %s1709_s22, %s1365_s26 }
  0x2f   : > { %p1362_p7 = pnand %p1360_p5, %p1717_p8  ;;  %p1368_p0 = scmp.lt.s32.totalorder %s1366_s10, %s1359_s17 }
  0x31   : > { %p1363_p9 = pneg %p1362_p7  ;;  %p1369_p11 = por %p1368_p0, %p1367_p3 }
  0x33   : > { %p1370_p12 = pnand %p1369_p11, %p1363_p9 }
  0x35   : > { %1373 = shalt.err (!%p1370_p12)
}
  0x36   : > { %s2397_s24 = smov 256   ;;  %s2399_s11 = smov 128  }
  0x37   : > { %s2401_s18 = smov 8   ;;  %s1745_s19 = sadd.s32 4294967295, %s1591_s30  }
  0x38   : > { %1260 = dma.hbm_to_vmem [thread:$0]  (!%p1696_p6), %s1705_s20, 384, %s1709_s22, %s1711_s23, %s2397_s24, %s2399_s11, %s2401_s18  }
  0x39   : > { %s1140_s17 = sadd.s32 4294967294, %s1591_s30   ;;  %p116_p0 = scmp.ne.s32.totalorder %s1583_s28, %s1579_s27 }
  0x3a   : > { %p2411_p3 = scmp.eq.s32.totalorder %s1745_s19, 0  ;;  %p244_p10 = scmp.eq.s32.totalorder %s1745_s19, 1 }
  0x3b   : > { %p250_p13 = scmp.eq.s32.totalorder %s1140_s17, 1  ;;  %p1141_p1 = scmp.ge.s32.totalorder %s1591_s30, 1 }
  0x3c   : > { %p1755_p2 = por %p2411_p3, %p116_p0  ;;  %p2428_p4 = scmp.ne.s32.totalorder %s1587_s29, %s1583_s28 }
  0x3d   : > { %p1766_p7 = por %p250_p13, %p116_p0  ;;  %p257_p9 = scmp.lt.s32.totalorder %s1591_s30, 3 }
  0x3e   : > { %s2427_s21 = scalar_select %p1755_p2, 1, 0 }
  0x3f   : > { %p1762_p5 = por %p244_p10, %p2428_p4  ;;  %p1771_p11 = pnand %p1141_p1, %p257_p9 }
  0x40   : > { %s2430_s22 = scalar_select %p1766_p7, 1, 0 }
  0x41   : > { %s2429_s20 = scalar_select %p1762_p5, 1, 0 }
  0x42   : > { %2431 = sst [smem:[#allocation29_spill]] %s2430_s22  ;;  %p1244_p12 = pneg %p1771_p11 }
  0x43   : > { %s2432_s26 = scalar_select %p1771_p11, 1, 0 }
  0x44   : > { %s2433_s2 = sld [smem:[#allocation31_spill]]  ;;  %p1784_p10 = pnand %p1244_p12, %p2411_p3 }
  0x45   : > { %s1792_s4 = scalar_lea.hbm %s2390_s3, %s1694_s15  ;;  %s2435_s12 = smul.u32 24, %s1690_s13 }
  0x46   : > { %s2436_s0 = sld [smem:[#allocation30_spill]]  ;;  %p1376_p13 = pneg %p1784_p10 }
  0x47   : > { %s303_s10 = scalar_lea.vmem [#allocation10], %s2435_s12 }
  0x48   : > { %s309_s17 = sshll.u32 %s303_s10, 4  ;;  %s1797_s17 = int_to_ptr.vmem [resolvable:$true] %s309_s17 }
  0x4a   : > { %s288_s24 = sshll.u32 %s2433_s2, 4  ;;  %s1780_s24 = int_to_ptr.vmem [resolvable:$true] %s288_s24 }
  0x4c   : > { %s1374_s30 = scalar_lea.hbm %s2436_s0, 64 }
  0x4d   : > { %p1375_p0 = scmp.ne.s32.totalorder %s2436_s0, %s1374_s30  ;;  %p1381_p9 = scmp.lt.u32.totalorder %s1374_s30, %s2436_s0 }
  0x4f   : > { %p1377_p1 = pnand %p1376_p13, %p1375_p0 }
  0x51   : > { %p1378_p4 = pneg %p1377_p1 }
  0x53   : > { %p1383_p12 = pnand %p1381_p9, %p1378_p4 }
  0x55   : > { %1386 = shalt.err (!%p1383_p12)
}
  0x56   : > { %s1597_s18 = smov [#allocation2]   ;;  %s1387_s10 = scalar_lea.hbm %s2388_s1, 64 }
  0x57   : > { %1247 = dma.hbm_to_smem (!%p1784_p10), %s2436_s0, 64, %s1597_s18, [#allocation5]  }
  0x58   : > { %p1388_p0 = scmp.ne.s32.totalorder %s2388_s1, %s1387_s10  ;;  %p1394_p9 = scmp.lt.u32.totalorder %s1387_s10, %s2388_s1 }
  0x5a   : > { %p1390_p1 = pnand %p1388_p0, %p1376_p13 }
  0x5c   : > { %p1391_p4 = pneg %p1390_p1 }
  0x5e   : > { %p1396_p12 = pnand %p1394_p9, %p1391_p4 }
  0x60   : > { %1399 = shalt.err (!%p1396_p12)
}
  0x61   : > { %s1598_s12 = smov [#allocation7]   ;;  %s1400_s2 = scalar_lea.vmem %s1780_s24, 16 }
  0x62   : > { %1250 = dma.hbm_to_smem (!%p1784_p10), %s2388_s1, 64, %s1598_s12, [#allocation8]  }
  0x63   : > { %p1401_p0 = scmp.ne.s32.totalorder %s1780_s24, %s1400_s2  ;;  %p1408_p4 = scmp.lt.s32.totalorder %s1780_s24, %s1780_s24 }
  0x64   : > { %p1409_p9 = scmp.lt.s32.totalorder %s1400_s2, %s1400_s2 }
  0x65   : > { %p1403_p1 = pnand %p1401_p0, %p1376_p13 }
  0x66   : > { %p1410_p12 = por %p1409_p9, %p1408_p4 }
  0x67   : > { %p1404_p3 = pneg %p1403_p1 }
  0x69   : > { %p1411_p7 = pnand %p1410_p12, %p1404_p3 }
  0x6b   : > { %1414 = shalt.err (!%p1411_p7)
}
  0x6c   : > { %s1599_s8 = smov [#allocation9]   ;;  %s300_s9 = scalar_lea.sflag [#allocation3], %s1690_s13 }
  0x6d   : > { %1253 = dma.vmem_to_smem (!%p1784_p10), %s1780_s24, 16, %s1599_s8, [#allocation6]  }
  0x6e   : > { %s1415_s27 = scalar_lea.hbm %s1792_s4, 384  ;;  %s1420_s30 = scalar_lea.hbm %s2390_s3, 768 }
  0x6f   : > { %p1416_p13 = scmp.ne.s32.totalorder %s1792_s4, %s1415_s27  ;;  %p1421_p3 = scmp.lt.u32.totalorder %s1792_s4, %s2390_s3 }
  0x70   : > { %p1422_p7 = scmp.lt.u32.totalorder %s1420_s30, %s1415_s27  ;;  %p1424_p9 = scmp.lt.u32.totalorder %s1415_s27, %s1792_s4 }
  0x71   : > { %p1418_p0 = pnand %p1416_p13, %p1717_p8 }
  0x72   : > { %p1423_p4 = por %p1422_p7, %p1421_p3 }
  0x73   : > { %p1419_p1 = pneg %p1418_p0 }
  0x74   : > { %p1425_p12 = por %p1424_p9, %p1423_p4 }
  0x76   : > { %p1426_p5 = pnand %p1425_p12, %p1419_p1 }
  0x78   : > { %1429 = shalt.err (!%p1426_p5)
}
  0x79   : > { %s1430_s24 = scalar_lea.vmem %s1797_s17, 384  ;;  %s1600_s12 = smov [#allocation10]  }
  0x7a   : > { %p1431_p10 = scmp.ne.s32.totalorder %s1797_s17, %s1430_s24  ;;  %s1435_s18 = sshll.u32 %s1600_s12, 4  ;;  %s1436_s18 = int_to_ptr.vmem [resolvable:$false] %s1435_s18 }
  0x7b   : > { %s1437_s29 = scalar_lea.vmem %s1436_s18, 768  ;;  %p1438_p2 = scmp.lt.s32.totalorder %s1797_s17, %s1436_s18 }
  0x7c   : > { %p1433_p13 = pnand %p1431_p10, %p1717_p8  ;;  %p1439_p11 = scmp.lt.s32.totalorder %s1437_s29, %s1430_s24 }
  0x7e   : > { %p1434_p0 = pneg %p1433_p13  ;;  %p1440_p3 = por %p1439_p11, %p1438_p2 }
  0x80   : > { %p1441_p7 = pnand %p1440_p3, %p1434_p0 }
  0x82   : > { %1444 = shalt.err (!%p1441_p7)
}
  0x83   : > { %s2437_s2 = smov 8   ;;  %s2438_s8 = smov 128  }
  0x84   : > { %s2439_s27 = smov 256   ;;  %s1876_s30 = scalar_lea.hbm %s2392_s5, %s1694_s15 }
  0x85   : > { %1257 = dma.hbm_to_vmem [thread:$0]  (!%p1696_p6), %s1792_s4, 384, %s1797_s17, %s300_s9, %s2439_s27, %s2438_s8, %s2437_s2  }
  0x86   : > { %s2440_s14 = sshll.u32 %s1690_s13, 5  ;;  %s1218_s12 = smul.u32 96, %s1690_s13 }
  0x87   : > { %s343_s11 = scalar_lea.vmem [#allocation13], %s2440_s14  ;;  %s1445_s18 = scalar_lea.hbm %s1876_s30, 512 }
  0x88   : > { %s349_s24 = sshll.u32 %s343_s11, 4  ;;  %p1446_p2 = scmp.ne.s32.totalorder %s1876_s30, %s1445_s18  ;;  %s1880_s24 = int_to_ptr.vmem [resolvable:$true] %s349_s24 }
  0x89   : > { %s1450_s9 = scalar_lea.hbm %s2392_s5, 1024  ;;  %p1451_p1 = scmp.lt.u32.totalorder %s1876_s30, %s2392_s5 }
  0x8a   : > { %p1448_p5 = pnand %p1446_p2, %p1717_p8  ;;  %p1452_p4 = scmp.lt.u32.totalorder %s1450_s9, %s1445_s18 }
  0x8b   : > { %p1454_p12 = scmp.lt.u32.totalorder %s1445_s18, %s1876_s30 }
  0x8c   : > { %p1449_p11 = pneg %p1448_p5  ;;  %p1453_p9 = por %p1452_p4, %p1451_p1 }
  0x8e   : > { %p1455_p10 = por %p1454_p12, %p1453_p9 }
  0x90   : > { %p1456_p13 = pnand %p1455_p10, %p1449_p11 }
  0x92   : > { %1459 = shalt.err (!%p1456_p13)
}
  0x93   : > { %s1460_s10 = scalar_lea.vmem %s1880_s24, 512  ;;  %s1601_s14 = smov [#allocation13]  }
  0x94   : > { %p1461_p0 = scmp.ne.s32.totalorder %s1880_s24, %s1460_s10  ;;  %s1465_s11 = sshll.u32 %s1601_s14, 4  ;;  %s1466_s11 = int_to_ptr.vmem [resolvable:$false] %s1465_s11 }
  0x95   : > { %s1467_s4 = scalar_lea.vmem %s1466_s11, 1024  ;;  %p1468_p2 = scmp.lt.s32.totalorder %s1880_s24, %s1466_s11 }
  0x96   : > { %p1463_p3 = pnand %p1461_p0, %p1717_p8  ;;  %p1469_p5 = scmp.lt.s32.totalorder %s1467_s4, %s1460_s10 }
  0x98   : > { %p1464_p7 = pneg %p1463_p3  ;;  %p1470_p1 = por %p1469_p5, %p1468_p2 }
  0x9a   : > { %p1471_p4 = pnand %p1470_p1, %p1464_p7 }
  0x9c   : > { %1474 = shalt.err (!%p1471_p4)
}
  0x9d   : > { %1263 = dma.hbm_to_vmem [thread:$0]  (!%p1696_p6), %s1876_s30, 512, %s1880_s24, %s1711_s23, %s2439_s27, %s2438_s8, %s2437_s2  }
  0x9e   : > { %s1912_s9 = scalar_lea.hbm %s2394_s7, %s1694_s15  ;;  %s370_s29 = scalar_lea.vmem [#allocation14], %s1218_s12 }
  0x9f   : > { %s376_s22 = sshll.u32 %s370_s29, 4  ;;  %s367_s10 = scalar_lea.sflag [#allocation15], %s1690_s13  ;;  %s1916_s22 = int_to_ptr.vmem [resolvable:$true] %s376_s22 }
  0xa0   : > { %s1475_s14 = scalar_lea.hbm %s1912_s9, 1536  ;;  %s1480_s15 = scalar_lea.hbm %s2394_s7, 3072 }
  0xa1   : > { %p1476_p11 = scmp.ne.s32.totalorder %s1912_s9, %s1475_s14  ;;  %p1481_p10 = scmp.lt.u32.totalorder %s1912_s9, %s2394_s7 }
  0xa2   : > { %p1482_p13 = scmp.lt.u32.totalorder %s1480_s15, %s1475_s14  ;;  %p1484_p3 = scmp.lt.u32.totalorder %s1475_s14, %s1912_s9 }
  0xa3   : > { %p1478_p9 = pnand %p1476_p11, %p1717_p8 }
  0xa4   : > { %p1483_p0 = por %p1482_p13, %p1481_p10 }
  0xa5   : > { %p1479_p12 = pneg %p1478_p9 }
  0xa6   : > { %p1485_p7 = por %p1484_p3, %p1483_p0 }
  0xa8   : > { %p1486_p2 = pnand %p1485_p7, %p1479_p12 }
  0xaa   : > { %1489 = shalt.err (!%p1486_p2)
}
  0xab   : > { %s1490_s12 = scalar_lea.vmem %s1916_s22, 1536  ;;  %s1602_s4 = smov [#allocation14]  }
  0xac   : > { %p1491_p5 = scmp.ne.s32.totalorder %s1916_s22, %s1490_s12  ;;  %s1495_s18 = sshll.u32 %s1602_s4, 4  ;;  %s1496_s18 = int_to_ptr.vmem [resolvable:$false] %s1495_s18 }
  0xad   : > { %s1497_s17 = scalar_lea.vmem %s1496_s18, 3072  ;;  %p1498_p11 = scmp.lt.s32.totalorder %s1916_s22, %s1496_s18 }
  0xae   : > { %p1493_p1 = pnand %p1491_p5, %p1717_p8  ;;  %p1499_p9 = scmp.lt.s32.totalorder %s1497_s17, %s1490_s12 }
  0xb0   : > { %p1494_p4 = pneg %p1493_p1  ;;  %p1500_p10 = por %p1499_p9, %p1498_p11 }
  0xb2   : > { %p1501_p13 = pnand %p1500_p10, %p1494_p4 }
  0xb4   : > { %1504 = shalt.err (!%p1501_p13)
}
  0xb5   : > { %1266 = dma.hbm_to_vmem [thread:$0]  (!%p1696_p6), %s1912_s9, 1536, %s1916_s22, %s367_s10, %s2439_s27, %s2438_s8, %s2437_s2  }
  0xb6   : > { %p2441_p8 = scmp.ne.s32.totalorder %s2432_s26, 0 }
  0xb7   : > { %p2442_p12 = scmp.eq.s32.totalorder (!%p2441_p8), %s1745_s19, 0 }
  0xb8   : > { %388 = sbr.rel (%p2441_p8) target bundleno = 368 (0x170), region = 52 }
  0xbf   : > { %1550 = dma.done.wait (%p2442_p12), [#allocation5], 64   ;;  %p2443_p0 = pmov %p2442_p12 }
  0xc1   : > { %1552 = vsyncadd (%p2443_p0), [#allocation5], 4294967232  ;;  %p2444_p3 = pmov %p2443_p0 }
  0xc2   : > { %p2445_p7 = pmov %p2443_p0 }
  0xc3   : > { %1554 = dma.done.wait (%p2444_p3), [#allocation8], 64  }
  0xc4   : > { %1556 = vsyncadd (%p2445_p7), [#allocation8], 4294967232  ;;  %p2446_p2 = pmov %p2443_p0 }
  0xc5   : > { %p2447_p6 = pmov %p2443_p0 }
  0xc6   : > { %1558 = dma.done.wait (%p2446_p2), [#allocation6], 16  }
  0xc7   : > { %1560 = vsyncadd (%p2447_p6), [#allocation6], 4294967280  ;;  %s1960_s13 = sand.u32 1, %s1583_s28   ;;  %p2448_p5 = scmp.ne.s32.totalorder %s2427_s21, 0 }
  0xc8   : > { %s1219_s16 = smul.u32 24, %s1960_s13  ;;  %s403_s25 = scalar_lea.sflag [#allocation3], %s1960_s13 }
  0xca   : > { %s1964_s26 = scalar_lea.vmem [#allocation10], %s1219_s16 }
  0xcb   : > { %1562 = dma.done.wait (%p2448_p5), %s403_s25, 384  }
  0xcc   : > { %1564 = vsyncadd (%p2448_p5), %s403_s25, 4294966912  ;;  %s411_s2 = sand.u32 1, %s1745_s19   ;;  %s415_s27 = scalar_lea.vmem [#allocation11], %s1219_s16 }
  0xcd   : > { %s412_s8 = scalar_lea.sflag [#allocation12], %s411_s2 }
  0xce   : > { %1566 = dma.done.wait (%p2448_p5), %s412_s8, 896  }
  0xcf   : > { %1568 = vsyncadd (%p2448_p5), %s412_s8, 4294966400  ;;  %s1155_s9 = sshll.u32 %s1960_s13, 5  ;;  %s1220_s29 = smul.u32 96, %s1960_s13 }
  0xd0   : > { %s1977_s22 = scalar_lea.vmem [#allocation13], %s1155_s9  ;;  %s430_s10 = scalar_lea.sflag [#allocation15], %s1960_s13 }
  0xd1   : > { %s1980_s14 = scalar_lea.vmem [#allocation14], %s1220_s29 }
  0xd2   : > { %1570 = dma.done.wait (%p2448_p5), %s430_s10, 1536  }
  0xd3   : > { %1572 = vsyncadd (%p2448_p5), %s430_s10, 4294965760 }
  0xd4   : > { %438 = sfence }
  0xd5   : > { %s1986_s23 = sld [smem:[#allocation2]]  ;;  %v595_v0 = vld [vmem:[%s415_s27] sm:$0xff]  ;;  %v1183_v1 = vld [vmem:[%s415_s27 + $0x8] sm:$0xff]  ;;  %s1992_s24 = sld [smem:[#allocation2 + $0x2]]  ;;  %v1184_v2 = vld [vmem:[%s415_s27 + $0x10] sm:$0xff] }
  0xd6   : > { %s1988_s30 = sld [smem:[#allocation2 + $0x80]]  ;;  %s1994_s11 = sld [smem:[#allocation2 + $0x102]]  ;;  %v596_v3 = vmul.f32 1.442695, %v595_v0  ;;  %v600_v4 = vmul.f32 1.442695, %v1183_v1 }
  0xd7   : > { %s1990_s15 = sld [smem:[#allocation2 + $0x100]]  ;;  %s2000_s4 = sld [smem:[#allocation7 + $0x3]]  ;;  %v604_v5 = vmul.f32 1.442695, %v1184_v2  ;;  %v2012_v7 = vld [vmem:[%s1977_s22] sm:$0xff]  ;;  %v2015_v8 = vld [vmem:[%s1977_s22 + $0x8] sm:$0xff] }
  0xd8   : > { %s1996_s12 = sld [smem:[#allocation7]]  ;;  %s2002_s18 = sld [smem:[#allocation7 + $0x83]]  ;;  %1320 = vpow2.f32 %v596_v3  ;;  %v2022_v9 = vld [vmem:[%s1977_s22 + $0x10] sm:$0xff]  ;;  %v2025_v10 = vld [vmem:[%s1964_s26] sm:$0xff]  ;;  %v620_v13 = vmul.f32 %v2012_v7, %v2012_v7  ;;  %v621_v14 = vmul.f32 %v2015_v8, %v2015_v8  ;;  %v2044_v15 = vld [vmem:[%s1964_s26 + $0x8] sm:$0xff] }
  0xd9   : > { %s1998_s21 = sld [smem:[#allocation7 + $0x80]]  ;;  %s2004_s17 = sld [smem:[#allocation2 + $0x1]]  ;;  %1322 = vpow2.f32 %v600_v4  ;;  %v623_v19 = vmul.f32 %v2022_v9, %v2022_v9  ;;  %v2066_v24 = vld [vmem:[%s1977_s22 + $0x18] sm:$0xff]  ;;  %v2070_v25 = vld [vmem:[%s1964_s26 + $0x10] sm:$0xff] }
  0xda   : > { %s2006_s16 = sld [smem:[#allocation7 + $0x103]]  ;;  %s2009_s25 = sld [smem:[#allocation7 + $0x1]]  ;;  %1324 = vpow2.f32 %v604_v5  ;;  %v622_v33 = vadd.f32 %v621_v14, %v620_v13  ;;  %v625_v37 = vmul.f32 %v2066_v24, %v2066_v24 }
  0xdb   : > { %v496_v6 = vstv %s1986_s23  ;;  %s2017_s2 = sld [smem:[#allocation7 + $0x183]]  ;;  %s2019_s8 = sld [smem:[#allocation7 + $0x81]]  ;;  %v2059_v21 = vstv %s1992_s24 }
  0xdc   : > { %v499_v11 = vstv %s1988_s30  ;;  %s2028_s27 = sld [smem:[#allocation7 + $0x100]]  ;;  %v2033_v12 = vmul.f32 %v496_v6, %v2025_v10  ;;  %s2035_s9 = sld [smem:[#allocation7 + $0x101]]  ;;  %v2062_v22 = vstv %s1994_s11  ;;  %v525_v34 = vmul.f32 %v2059_v21, %v2025_v10 }
  0xdd   : > { %s2037_s29 = sld [smem:[#allocation2 + $0x82]]  ;;  %v503_v16 = vstv %s1990_s15  ;;  %s2047_s10 = sld [smem:[#allocation2 + $0x101]]  ;;  %v569_v17 = vstv %s2000_s4  ;;  %v500_v20 = vmul.f32 %v2044_v15, %v499_v11  ;;  %v532_v38 = vmul.f32 %v2070_v25, %v2062_v22 }
  0xde   : > { %v572_v18 = vstv %s2002_s18  ;;  %s2051_s0 = sld [smem:[#allocation2 + $0x81]]  ;;  %v570_v23 = vmul.f32 %v569_v17, %v2025_v10  ;;  %p486_p1 = scmp.lt.s32.totalorder %s1745_s19, 1  ;;  %v541_v26 = vstv %s1996_s12  ;;  %v624_v50 = vadd.f32 %v623_v19, %v622_v33 }
  0xdf   : > { %v544_v27 = vstv %s1998_s21  ;;  %v573_v28 = vmul.f32 %v2044_v15, %v572_v18  ;;  %s2076_s24 = sld [smem:[#allocation2 + $0x182]]  ;;  %s2078_s11 = sld [smem:[#allocation9]]  ;;  %v510_v30 = vstv %s2004_s17  ;;  %v542_v39 = vmul.f32 %v541_v26, %v2025_v10 }
  0xe0   : > { %v576_v29 = vstv %s2006_s16  ;;  %v555_v32 = vstv %s2009_s25  ;;  %s2088_s26 = sld [smem:[#allocation9 + $0x1]]  ;;  %v545_v40 = vmul.f32 %v2044_v15, %v544_v27  ;;  %s2105_s12 = sld [smem:[#allocation9 + $0x2]]  ;;  %v511_v52 = vmul.f32 %v510_v30, %v2025_v10 }
  0xe1   : > { %v577_v31 = vmul.f32 %v2070_v25, %v576_v29  ;;  %v574_v35 = vadd.f32 %v573_v28, %v570_v23  ;;  %v558_v36 = vstv %s2019_s8  ;;  %v580_v41 = vstv %s2017_s2  ;;  %s2098_s22 = scalar_select %p486_p1, %s1745_s19, 1 }
  0xe2   : > { %v548_v42 = vstv %s2028_s27  ;;  %v556_v44 = vmul.f32 %v555_v32, %v2025_v10  ;;  %v2107_v46 = vpop.eup %1320  ;;  %s1221_s21 = smul.u32 88, %s1960_s13  ;;  %v559_v47 = vmul.f32 %v2044_v15, %v558_v36  ;;  %v562_v48 = vstv %s2035_s9  ;;  %s2118_s4 = sld [smem:[#allocation7 + $0x180]] }
  0xe3   : > { %v578_v43 = vadd.f32 %v577_v31, %v574_v35  ;;  %v2103_v45 = vstv %s2037_s29  ;;  %v1323_v51 = vpop.eup %1322  ;;  %v517_v53 = vstv %s2047_s10  ;;  %s2120_s18 = sld [smem:[#allocation7 + $0x181]]  ;;  %v546_v57 = vadd.f32 %v545_v40, %v542_v39  ;;  %s1156_s16 = sshll.u32 %s2098_s22, 3  ;;  %v864_v35 = vld [vmem:[%s1980_s14] sm:$0xff] }
  0xe4   : > { %v528_v49 = vmul.f32 %v2044_v15, %v2103_v45  ;;  %v513_v55 = vstv %s2051_s0  ;;  %v1325_v56 = vpop.eup %1324  ;;  %v549_v58 = vmul.f32 %v2070_v25, %v548_v42  ;;  %v626_v60 = vadd.f32 %v625_v37, %v624_v50  ;;  %s2125_s25 = sld [smem:[#allocation2 + $0x180]]  ;;  %s2137_s2 = sld [smem:[#allocation2 + $0x181]] }
  0xe5   : > { %v581_v54 = vadd.f32 %v580_v41, %v578_v43  ;;  %v563_v62 = vmul.f32 %v2070_v25, %v562_v48  ;;  %v535_v63 = vstv %s2076_s24  ;;  %v843_v0 = vstv %s2078_s11  ;;  %s489_s9 = scalar_lea.vmem %s2393_s6, %s1156_s16  ;;  %s2156_s29 = scalar_lea.vmem [#allocation16], %s1221_s21  ;;  %v1195_v41 = vld [vmem:[%s1980_s14 + $0x8] sm:$0xff] }
  0xe6   : > { %v529_v59 = vadd.f32 %v528_v49, %v525_v34  ;;  %v560_v1 = vadd.f32 %v559_v47, %v556_v44  ;;  %v514_v2 = vmul.f32 %v2044_v15, %v513_v55  ;;  %v627_v4 = vadd.f32 1e-12, %v626_v60  ;;  %s1213_s0 = sshll.u32 %s1745_s19, 7  ;;  %s2453_s15 = sld [smem:[#allocation33_spill]] }
  0xe7   : > { %v582_v61 = vadd.f32 1e-07, %v581_v54  ;;  %v501_v5 = vadd.f32 %v500_v20, %v2033_v12  ;;  %v504_v13 = vmul.f32 %v2070_v25, %v503_v16  ;;  %v846_v14 = vstv %s2088_s26  ;;  %s943_s10 = scalar_lea.sflag [#allocation4], %s1960_s13  ;;  %p2454_p11 = scmp.ne.s32.totalorder %s2429_s20, 0 }
  0xe8   : > { %v533_v3 = vadd.f32 %v532_v38, %v529_v59  ;;  %v844_v18 = vsub.f32 %v2025_v10, %v843_v0  ;;  %v2147_v12 = vsub.f32 %v2044_v15, %v846_v14  ;;  %v518_v19 = vmul.f32 %v2070_v25, %v517_v53  ;;  %v606_v10 = vld [vmem:[%s489_s9] sm:$0xff]  ;;  %s1603_s24 = smov [#allocation16]  }
  0xe9   : > { %1326 = vrcp.f32 %v582_v61  ;;  %v849_v20 = vstv %s2105_s12  ;;  %v550_v23 = vadd.f32 %v549_v58, %v546_v57  ;;  %v564_v26 = vadd.f32 %v563_v62, %v560_v1  ;;  %s1509_s11 = sshll.u32 %s1603_s24, 4  ;;  %s1510_s11 = int_to_ptr.vmem [resolvable:$false] %s1509_s11 }
  0xea   : > { %v2143_v17 = vadd.f32 %v535_v63, %v533_v3  ;;  %1328 = vrsqrt.f32 %v627_v4  ;;  %v515_v27 = vadd.f32 %v514_v2, %v511_v52  ;;  %v552_v15 = vstv %s2118_s4  ;;  %s1511_s26 = scalar_lea.vmem %s1510_s11, 2816 }
  0xeb   : > { %v566_v29 = vstv %s2120_s18  ;;  %v505_v31 = vadd.f32 %v504_v13, %v501_v5  ;;  %v2163_v32 = vsub.f32 %v2070_v25, %v849_v20  ;;  %v851_v33 = vmul.f32 %v844_v18, %v844_v18 }
  0xec   : > { %v537_v28 = vand.u32 2147483647, %v2143_v17  ;;  %1211 = vst [vmem:[%s2156_s29 + $0x48] sm:$0xff] %v2143_v17  ;;  %v852_v34 = vmul.f32 %v2147_v12, %v2147_v12  ;;  %v507_v36 = vstv %s2125_s25  ;;  %v607_v37 = vsub.f32 0.0, %v606_v10  ;;  %s2338_s17 = scalar_lea.hbm %s2453_s15, %s1213_s0 }
  0xed   : > { %v553_v38 = vadd.f32 %v552_v15, %v550_v23  ;;  %v567_v39 = vadd.f32 %v566_v29, %v564_v26  ;;  %v519_v40 = vadd.f32 %v518_v19, %v515_v27  ;;  %v521_v42 = vstv %s2137_s2 }
  0xee   : > { %vm2169_vm0 = vcmp.lt.f32.partialorder %v537_v28, 1e-06  ;;  %v2174_v43 = vmul.f32 0.2820948, %v864_v35  ;;  %v2176_v44 = vadd.f32 %v507_v36, %v505_v31  ;;  %v2180_v25 = vmul.f32 %v2107_v46, %v2107_v46 }
  0xef   : > { %v853_v47 = vadd.f32 %v852_v34, %v851_v33  ;;  %v854_v48 = vmul.f32 %v2163_v32, %v2163_v32  ;;  %v539_v50 = vsel %vm2169_vm0, 1e-06, %v2143_v17  ;;  %v2187_v52 = vmul.f32 %v1323_v51, %v1323_v51 }
  0xf0   : > { %v2189_v54 = vmul.f32 %v1325_v56, %v1325_v56  ;;  %v2191_v57 = vmul.f32 1.442695, %v607_v37  ;;  %v2193_v46 = vadd.f32 %v521_v42, %v519_v40  ;;  %v2195_v61 = vmul.f32 0.48860252, %v844_v18 }
  0xf1   : > { %1330 = vrcp.f32 %v539_v50  ;;  %v855_v2 = vadd.f32 %v854_v48, %v853_v47  ;;  %vm914_vm1 = vcmp.gt.f32.partialorder %v2143_v17, 0.2 }
  0xf3   : > { %v1327_v49 = vpop.eup %1326  ;;  %v856_v31 = vadd.f32 1e-12, %v855_v2 }
  0xf4   : > { %v1329_v58 = vpop.eup %1328  ;;  %v585_v59 = vmul.f32 %v1327_v49, %v553_v38  ;;  %v590_v60 = vmul.f32 %v1327_v49, %v567_v39 }
  0xf5   : > { %v629_v62 = vmul.f32 %v1329_v58, %v2012_v7  ;;  %v630_v63 = vmul.f32 %v1329_v58, %v2015_v8  ;;  %v631_v0 = vmul.f32 %v1329_v58, %v2022_v9  ;;  %v632_v51 = vmul.f32 %v1329_v58, %v2066_v24 }
  0xf6   : > { %v586_v1 = vadd.f32 1.0, %v585_v59  ;;  %v591_v56 = vadd.f32 1.0, %v590_v60  ;;  %1332 = vrsqrt.f32 %v856_v31 }
  0xf7   : > { %v633_v3 = vmul.f32 %v631_v0, %v631_v0  ;;  %v634_v4 = vmul.f32 %v632_v51, %v632_v51  ;;  %v638_v5 = vmul.f32 %v631_v0, %v630_v63  ;;  %v639_v13 = vmul.f32 %v632_v51, %v629_v62 }
  0xf8   : > { %v587_v14 = vmul.f32 16.0, %v586_v1  ;;  %v592_v19 = vmul.f32 16.0, %v591_v56  ;;  %v642_v18 = vmul.f32 %v632_v51, %v630_v63  ;;  %v643_v20 = vmul.f32 %v631_v0, %v629_v62 }
  0xf9   : > { %v635_v23 = vadd.f32 %v634_v4, %v633_v3  ;;  %v640_v7 = vsub.f32 %v638_v5, %v639_v13  ;;  %v646_v26 = vadd.f32 %v639_v13, %v638_v5  ;;  %v648_v8 = vmul.f32 %v630_v63, %v630_v63 }
  0xfa   : > { %v1181_v27 = vadd.f32 -1.0, %v587_v14  ;;  %v1182_v9 = vadd.f32 -1.0, %v592_v19  ;;  %v644_v24 = vadd.f32 %v643_v20, %v642_v18  ;;  %v652_v28 = vmul.f32 %v632_v51, %v631_v0 }
  0xfb   : > { %v636_v10 = vmul.f32 2.0, %v635_v23  ;;  %v641_v15 = vmul.f32 2.0, %v640_v7  ;;  %v649_v29 = vadd.f32 %v648_v8, %v634_v4  ;;  %v647_v35 = vmul.f32 2.0, %v646_v26  ;;  %v1331_v0 = vpop.eup %1330 }
  0xfc   : > { %v589_v33 = vmul.f32 0.5, %v1181_v27  ;;  %v594_v34 = vmul.f32 0.5, %v1182_v9  ;;  %v653_v36 = vmul.f32 %v630_v63, %v629_v62  ;;  %v656_v39 = vsub.f32 %v642_v18, %v643_v20 }
  0xfd   : > { %v637_v37 = vsub.f32 1.0, %v636_v10  ;;  %v650_v38 = vmul.f32 2.0, %v649_v29  ;;  %v660_v40 = vadd.f32 %v648_v8, %v633_v3  ;;  %v645_v42 = vmul.f32 2.0, %v644_v24 }
  0xfe   : > { %918 = vst [vmem:[%s2156_s29] sm:$0xff] %v589_v33  ;;  %1203 = vst [vmem:[%s2156_s29 + $0x8] sm:$0xff] %v594_v34  ;;  %v654_v47 = vsub.f32 %v652_v28, %v653_v36  ;;  %v658_v48 = vadd.f32 %v653_v36, %v652_v28  ;;  %v668_v49 = vmul.f32 %v641_v15, %v641_v15  ;;  %v657_v58 = vmul.f32 2.0, %v656_v39 }
  0xff   : > { %v651_v50 = vsub.f32 1.0, %v650_v38  ;;  %v661_v59 = vmul.f32 2.0, %v660_v40  ;;  %v666_v60 = vmul.f32 %v637_v37, %v637_v37  ;;  %v671_v56 = vmul.f32 %v645_v42, %v645_v42 }
 0x100   : > { %v655_v51 = vmul.f32 2.0, %v654_v47  ;;  %v659_v1 = vmul.f32 2.0, %v658_v48  ;;  %v2204_v62 = vmul.f32 0.2820948, %v1195_v41  ;;  %v669_v2 = vmul.f32 %v668_v49, %v2187_v52 }
 0x101   : > { %v662_v63 = vsub.f32 1.0, %v661_v59  ;;  %v674_v3 = vmul.f32 %v647_v35, %v637_v37  ;;  %v676_v4 = vmul.f32 %v651_v50, %v641_v15  ;;  %v667_v5 = vmul.f32 %v666_v60, %v2180_v25 }
 0x102   : > { %v682_v13 = vmul.f32 %v657_v58, %v637_v37  ;;  %v684_v14 = vmul.f32 %v659_v1, %v641_v15  ;;  %v690_v19 = vmul.f32 %v647_v35, %v647_v35  ;;  %v679_v18 = vmul.f32 %v655_v51, %v645_v42 }
 0x103   : > { %v860_v20 = vmul.f32 0.48860252, %v2147_v12  ;;  %v862_v23 = vmul.f32 0.48860252, %v2163_v32  ;;  %v672_v7 = vmul.f32 %v671_v56, %v2189_v54  ;;  %v675_v26 = vmul.f32 %v674_v3, %v2180_v25 }
 0x104   : > { %v677_v8 = vmul.f32 %v676_v4, %v2187_v52  ;;  %v687_v27 = vmul.f32 %v662_v63, %v645_v42  ;;  %v683_v9 = vmul.f32 %v682_v13, %v2180_v25  ;;  %v685_v24 = vmul.f32 %v684_v14, %v2187_v52 }
 0x105   : > { %v691_v28 = vmul.f32 %v690_v19, %v2180_v25  ;;  %v692_v10 = vmul.f32 %v651_v50, %v651_v50  ;;  %v670_v15 = vadd.f32 %v669_v2, %v667_v5  ;;  %v695_v29 = vmul.f32 %v655_v51, %v655_v51 }
 0x106   : > { %v698_v12 = vmul.f32 %v657_v58, %v647_v35  ;;  %v700_v31 = vmul.f32 %v659_v1, %v651_v50  ;;  %v680_v32 = vmul.f32 %v679_v18, %v2189_v54  ;;  %v703_v34 = vmul.f32 %v662_v63, %v655_v51  ;;  %v1199_v35 = vld [vmem:[%s1980_s14 + $0x10] sm:$0xff] }
 0x107   : > { %v693_v33 = vmul.f32 %v692_v10, %v2187_v52  ;;  %v706_v36 = vmul.f32 %v657_v58, %v657_v58  ;;  %v678_v37 = vadd.f32 %v677_v8, %v675_v26  ;;  %v688_v38 = vmul.f32 %v687_v27, %v2189_v54  ;;  %v1194_v8 = vld [vmem:[%s1980_s14 + $0x48] sm:$0xff]  ;;  %v1198_v10 = vld [vmem:[%s1980_s14 + $0x50] sm:$0xff] }
 0x108   : > { %v699_v39 = vmul.f32 %v698_v12, %v2180_v25  ;;  %v701_v40 = vmul.f32 %v700_v31, %v2187_v52  ;;  %v686_v41 = vadd.f32 %v685_v24, %v683_v9  ;;  %v696_v47 = vmul.f32 %v695_v29, %v2189_v54 }
 0x109   : > { %v694_v42 = vadd.f32 %v693_v33, %v691_v28  ;;  %v708_v48 = vmul.f32 %v659_v1, %v659_v1  ;;  %v707_v49 = vmul.f32 %v706_v36, %v2180_v25  ;;  %v711_v50 = vmul.f32 %v662_v63, %v662_v63  ;;  %v1333_v25 = vpop.eup %1332  ;;  %v1196_v28 = vld [vmem:[%s1980_s14 + $0x20] sm:$0xff] }
 0x10a   : > { %v716_v59 = vmul.f32 %v1331_v0, %v2176_v44  ;;  %v720_v58 = vmul.f32 %v1331_v0, %v2193_v46  ;;  %v702_v60 = vadd.f32 %v701_v40, %v699_v39  ;;  %v704_v51 = vmul.f32 %v703_v34, %v2189_v54  ;;  %v1193_v34 = vld [vmem:[%s1980_s14 + $0x30] sm:$0xff] }
 0x10b   : > { %v709_v56 = vmul.f32 %v708_v48, %v2187_v52  ;;  %v725_v2 = vmul.f32 13.856406, %v1331_v0  ;;  %1334 = vpow2.f32 %v2191_v57  ;;  %v2229_v1 = vmul.f32 0.2820948, %v1199_v35 }
 0x10c   : > { %v1188_v3 = vclamps-f32 %v716_v59, 0.75055534  ;;  %v1189_v4 = vclamps-f32 %v720_v58, 0.75055534  ;;  %v2231_v63 = vadd.f32 %v672_v7, %v670_v15  ;;  %v2233_v44 = vadd.f32 %v680_v32, %v678_v37 }
 0x10d   : > { %v2235_v46 = vadd.f32 %v688_v38, %v686_v41  ;;  %v724_v52 = vmul.f32 %v1331_v0, %v1331_v0  ;;  %v710_v5 = vadd.f32 %v709_v56, %v707_v49  ;;  %v712_v13 = vmul.f32 %v711_v50, %v2189_v54  ;;  %v1192_v0 = vld [vmem:[%s1980_s14 + $0x18] sm:$0xff] }
 0x10e   : > { %v719_v57 = vmul.f32 %v1188_v3, %v2143_v17  ;;  %v723_v14 = vmul.f32 %v1189_v4, %v2143_v17  ;;  %v2240_v19 = vadd.f32 %v696_v47, %v694_v42  ;;  %v2242_v18 = vadd.f32 %v704_v51, %v702_v60 }
 0x10f   : > { %v730_v7 = vmul.f32 %v725_v2, %v496_v6  ;;  %v2247_v26 = vmul.f32 %v1333_v25, %v2195_v61  ;;  %v733_v9 = vmul.f32 %v725_v2, %v499_v11  ;;  %v2253_v24 = vmul.f32 %v1333_v25, %v860_v20  ;;  %v1197_v11 = vld [vmem:[%s1980_s14 + $0x38] sm:$0xff] }
 0x110   : > { %v726_v54 = vmul.f32 -13.856406, %v719_v57  ;;  %v728_v27 = vmul.f32 -13.856406, %v723_v14  ;;  %v736_v15 = vmul.f32 %v725_v2, %v503_v16  ;;  %v739_v6 = vmul.f32 %v725_v2, %v510_v30 }
 0x111   : > { %v742_v61 = vmul.f32 %v725_v2, %v513_v55  ;;  %v2263_v29 = vmul.f32 %v1333_v25, %v862_v23  ;;  %v2265_v12 = vadd.f32 %v712_v13, %v710_v5  ;;  %v868_v33 = vmul.f32 %v1192_v0, %v2253_v24 }
 0x112   : > { %v727_v31 = vmul.f32 %v726_v54, %v724_v52  ;;  %v729_v32 = vmul.f32 %v728_v27, %v724_v52  ;;  %v745_v20 = vmul.f32 %v725_v2, %v517_v53  ;;  %v2273_v36 = vmul.f32 %v1194_v8, %v2247_v26 }
 0x113   : > { %v885_v16 = vmul.f32 %v1196_v28, %v2253_v24  ;;  %v2277_v30 = vmul.f32 %v1198_v10, %v2247_v26  ;;  %v872_v40 = vmul.f32 %v1193_v34, %v2263_v29  ;;  %v889_v41 = vmul.f32 %v1197_v11, %v2263_v29 }
 0x114   : > { %v731_v55 = vmul.f32 %v727_v31, %v2059_v21  ;;  %v734_v23 = vmul.f32 %v727_v31, %v2103_v45  ;;  %v737_v37 = vmul.f32 %v727_v31, %v2062_v22  ;;  %v740_v38 = vmul.f32 %v729_v32, %v2059_v21 }
 0x115   : > { %v743_v39 = vmul.f32 %v729_v32, %v2103_v45  ;;  %v746_v53 = vmul.f32 %v729_v32, %v2062_v22  ;;  %v2287_v42 = vpop.eup %1334  ;;  %v869_v49 = vsub.f32 %v2174_v43, %v868_v33  ;;  %v886_v21 = vsub.f32 %v2204_v62, %v885_v16  ;;  %v1200_v32 = vld [vmem:[%s1980_s14 + $0x28] sm:$0xff]  ;;  %v1201_v33 = vld [vmem:[%s1980_s14 + $0x40] sm:$0xff] }
 0x116   : > { %v732_v47 = vadd.f32 %v731_v55, %v730_v7  ;;  %v735_v48 = vadd.f32 %v734_v23, %v733_v9  ;;  %v738_v35 = vadd.f32 %v737_v37, %v736_v15  ;;  %v741_v50 = vadd.f32 %v740_v38, %v739_v6 }
 0x117   : > { %v744_v59 = vadd.f32 %v743_v39, %v742_v61  ;;  %v747_v58 = vadd.f32 %v746_v53, %v745_v20  ;;  %v873_v43 = vadd.f32 %v872_v40, %v869_v49  ;;  %v890_v53 = vadd.f32 %v889_v41, %v886_v21 }
 0x118   : > { %v748_v60 = vmul.f32 %v732_v47, %v732_v47  ;;  %v750_v45 = vmul.f32 %v735_v48, %v735_v48  ;;  %v753_v51 = vmul.f32 %v738_v35, %v738_v35  ;;  %v756_v22 = vmul.f32 %v735_v48, %v732_v47 }
 0x119   : > { %v758_v56 = vmul.f32 %v738_v35, %v732_v47  ;;  %v761_v2 = vmul.f32 %v738_v35, %v735_v48  ;;  %v767_v3 = vmul.f32 %v741_v50, %v732_v47  ;;  %v769_v4 = vmul.f32 %v744_v59, %v735_v48 }
 0x11a   : > { %v749_v25 = vmul.f32 %v748_v60, %v2231_v63  ;;  %v751_v52 = vmul.f32 %v750_v45, %v2240_v19  ;;  %v757_v5 = vmul.f32 %v756_v22, %v2233_v44  ;;  %v754_v7 = vmul.f32 %v753_v51, %v2265_v12 }
 0x11b   : > { %v759_v13 = vmul.f32 %v758_v56, %v2235_v46  ;;  %v762_v62 = vmul.f32 %v761_v2, %v2242_v18  ;;  %v768_v57 = vmul.f32 %v767_v3, %v2231_v63  ;;  %v770_v14 = vmul.f32 %v769_v4, %v2240_v19  ;;  %v1202_v2 = vld [vmem:[%s1980_s14 + $0x58] sm:$0xff]  ;;  %s955_s14 = sshll.u32 %s2156_s29, 4  ;;  %s2340_s14 = int_to_ptr.vmem [resolvable:$true] %s955_s14 }
 0x11c   : > { %v772_v0 = vmul.f32 %v747_v58, %v738_v35  ;;  %v775_v8 = vmul.f32 %v744_v59, %v732_v47  ;;  %v776_v54 = vmul.f32 %v741_v50, %v735_v48  ;;  %v780_v28 = vmul.f32 %v747_v58, %v732_v47  ;;  %s1505_s19 = scalar_lea.vmem %s2340_s14, 1408  ;;  %p1512_p13 = scmp.lt.s32.totalorder %s2340_s14, %s1510_s11 }
 0x11d   : > { %v760_v27 = vadd.f32 %v759_v13, %v757_v5  ;;  %v771_v9 = vadd.f32 %v770_v14, %v768_v57  ;;  %v781_v10 = vmul.f32 %v741_v50, %v738_v35  ;;  %v752_v15 = vadd.f32 %v751_v52, %v749_v25  ;;  %p1506_p4 = scmp.ne.s32.totalorder %s2340_s14, %s1505_s19  ;;  %p1513_p8 = scmp.lt.s32.totalorder %s1511_s26, %s1505_s19 }
 0x11e   : > { %v773_v6 = vmul.f32 %v772_v0, %v2265_v12  ;;  %v777_v61 = vadd.f32 %v776_v54, %v775_v8  ;;  %v785_v31 = vmul.f32 %v747_v58, %v735_v48  ;;  %v786_v20 = vmul.f32 %v744_v59, %v738_v35 }
 0x11f   : > { %v763_v34 = vadd.f32 %v762_v62, %v760_v27  ;;  %v782_v11 = vadd.f32 %v781_v10, %v780_v28  ;;  %v790_v16 = vmul.f32 %v741_v50, %v741_v50  ;;  %v792_v37 = vmul.f32 %v744_v59, %v744_v59  ;;  %p1507_p9 = pnand %p1506_p4, %p2454_p11  ;;  %p1514_p12 = por %p1513_p8, %p1512_p13 }
 0x120   : > { %v774_v55 = vadd.f32 %v773_v6, %v771_v9  ;;  %v778_v23 = vmul.f32 %v777_v61, %v2233_v44  ;;  %v795_v38 = vmul.f32 %v747_v58, %v747_v58  ;;  %v902_v40 = vmul.f32 %v1200_v32, %v2253_v24 }
 0x121   : > { %v791_v39 = vmul.f32 %v790_v16, %v2231_v63  ;;  %v906_v47 = vmul.f32 %v1201_v33, %v2263_v29  ;;  %v755_v48 = vadd.f32 %v754_v7, %v752_v15  ;;  %v783_v49 = vmul.f32 %v782_v11, %v2235_v46  ;;  %p1508_p10 = pneg %p1507_p9 }
 0x122   : > { %v793_v60 = vmul.f32 %v792_v37, %v2240_v19  ;;  %v798_v35 = vmul.f32 %v744_v59, %v741_v50  ;;  %v779_v45 = vadd.f32 %v778_v23, %v774_v55  ;;  %v787_v51 = vadd.f32 %v786_v20, %v785_v31 }
 0x123   : > { %v800_v22 = vmul.f32 %v747_v58, %v741_v50  ;;  %v803_v56 = vmul.f32 %v747_v58, %v744_v59  ;;  %v764_v3 = vmul.f32 2.0, %v763_v34  ;;  %v796_v4 = vmul.f32 %v795_v38, %v2265_v12  ;;  %p1515_p0 = pnand %p1514_p12, %p1508_p10 }
 0x124   : > { %v799_v63 = vmul.f32 %v798_v35, %v2233_v44  ;;  %v877_v24 = vsub.f32 %v873_v43, %v2273_v36  ;;  %v794_v41 = vadd.f32 %v793_v60, %v791_v39  ;;  %v894_v19 = vsub.f32 %v890_v53, %v2277_v30 }
 0x125   : > { %v801_v29 = vmul.f32 %v800_v22, %v2235_v46  ;;  %v804_v21 = vmul.f32 %v803_v56, %v2242_v18  ;;  %v610_v25 = vadd.f32 1.0, %v2287_v42  ;;  %v903_v59 = vsub.f32 %v2229_v1, %v902_v40 }
 0x126   : > { %v878_v50 = vadd.f32 0.5, %v877_v24  ;;  %v910_v58 = vmul.f32 %v1202_v2, %v2247_v26  ;;  %v784_v12 = vadd.f32 %v783_v49, %v779_v45  ;;  %v788_v44 = vmul.f32 %v787_v51, %v2242_v18 }
 0x127   : > { %v802_v36 = vadd.f32 %v801_v29, %v799_v63  ;;  %v895_v52 = vadd.f32 0.5, %v894_v19  ;;  %v907_v46 = vadd.f32 %v906_v47, %v903_v59  ;;  %v765_v43 = vadd.f32 %v764_v3, %v755_v48 }
 0x128   : > { %v879_v5 = vmax.f32 %v878_v50, 0.0  ;;  %v797_v13 = vadd.f32 %v796_v4, %v794_v41  ;;  %1336 = vrcp.f32 %v610_v25  ;;  %v789_v57 = vadd.f32 %v788_v44, %v784_v12 }
 0x129   : > { %v805_v30 = vadd.f32 %v804_v21, %v802_v36  ;;  %v896_v62 = vmax.f32 %v895_v52, 0.0  ;;  %v911_v42 = vsub.f32 %v907_v46, %v910_v58  ;;  %v766_v14 = vadd.f32 0.3, %v765_v43 }
 0x12a   : > { %1208 = vst [vmem:[%s2156_s29 + $0x30] sm:$0xff] %v879_v5  ;;  %v810_v8 = vmul.f32 %v789_v57, %v789_v57  ;;  %v817_v17 = vsub.f32 0.0, %v789_v57 }
 0x12b   : > { %v806_v1 = vmul.f32 2.0, %v805_v30  ;;  %1209 = vst [vmem:[%s2156_s29 + $0x38] sm:$0xff] %v896_v62  ;;  %v912_v26 = vadd.f32 0.5, %v911_v42 }
 0x12d   : > { %v807_v7 = vadd.f32 %v806_v1, %v797_v13  ;;  %v913_v0 = vmax.f32 %v912_v26, 0.0 }
 0x12f   : > { %v808_v18 = vadd.f32 0.3, %v807_v7  ;;  %1210 = vst [vmem:[%s2156_s29 + $0x40] sm:$0xff] %v913_v0 }
 0x131   : > { %v809_v54 = vmul.f32 %v808_v18, %v766_v14  ;;  %v820_v27 = vadd.f32 %v808_v18, %v766_v14 }
 0x132   : > { %v1337_v10 = vpop.eup %1336 }
 0x133   : > { %v811_v9 = vsub.f32 %v809_v54, %v810_v8  ;;  %v821_v28 = vmul.f32 0.5, %v820_v27 }
 0x135   : > { %vm812_vm2 = vcmp.ne.f32.partialorder %v811_v9, 0.0  ;;  %v822_v15 = vmul.f32 %v821_v28, %v821_v28 }
 0x136   : > { %v813_v6 = vsel %vm812_vm2, %v811_v9, 1.0  ;;  %vm2323_vm3 = vmand %vm914_vm1, %vm812_vm2 }
 0x137   : > { %1338 = vrcp.f32 %v813_v6  ;;  %v823_v31 = vsub.f32 %v822_v15, %v811_v9  ;;  %v916_v32 = vsel %vm2323_vm3, %v1337_v10, 0.0 }
 0x138   : > { %1207 = vst [vmem:[%s2156_s29 + $0x28] sm:$0xff] %v916_v32 }
 0x139   : > { %v824_v33 = vmax.f32 %v823_v31, 0.1 }
 0x13b   : > { %1340 = vrsqrt.f32 %v824_v33  ;;  %vm827_vm4 = vcmp.eq.f32.partialorder %v824_v33, inf  ;;  %v830_v39 = vand.u32 2147483648, %v824_v33  ;;  %vm829_vm5 = vcmp.eq.f32.partialorder %v824_v33, 0.0 }
 0x141   : > { %v1339_v34 = vpop.eup %1338 }
 0x142   : > { %v816_v11 = vmul.f32 %v1339_v34, %v808_v18  ;;  %v818_v20 = vmul.f32 %v1339_v34, %v817_v17  ;;  %v819_v16 = vmul.f32 %v1339_v34, %v766_v14 }
 0x144   : > { %v921_v55 = vmul.f32 -0.5, %v816_v11  ;;  %v924_v23 = vsub.f32 0.0, %v818_v20  ;;  %v927_v37 = vmul.f32 -0.5, %v819_v16 }
 0x145   : > { %v1341_v38 = vpop.eup %1340 }
 0x146   : > { %v826_v53 = vmul.f32 %v1341_v38, %v824_v33  ;;  %1204 = vst [vmem:[%s2156_s29 + $0x10] sm:$0xff] %v921_v55  ;;  %1205 = vst [vmem:[%s2156_s29 + $0x18] sm:$0xff] %v924_v23 }
 0x147   : > { %1206 = vst [vmem:[%s2156_s29 + $0x20] sm:$0xff] %v927_v37 }
 0x148   : > { %v828_v40 = vsel %vm827_vm4, %v824_v33, %v826_v53 }
 0x149   : > { %v831_v47 = vsel %vm829_vm5, %v830_v39, %v828_v40 }
 0x14a   : > { %v832_v48 = vadd.f32 %v831_v47, %v821_v28 }
 0x14c   : > { %1342 = vrsqrt.f32 %v832_v48  ;;  %vm835_vm6 = vcmp.eq.f32.partialorder %v832_v48, inf  ;;  %v838_v60 = vand.u32 2147483648, %v832_v48  ;;  %vm837_vm7 = vcmp.eq.f32.partialorder %v832_v48, 0.0 }
 0x156   : > { %v1343_v49 = vpop.eup %1342 }
 0x157   : > { %v834_v35 = vmul.f32 %v1343_v49, %v832_v48 }
 0x159   : > { %v836_v45 = vsel %vm835_vm6, %v832_v48, %v834_v35 }
 0x15a   : > { %v839_v51 = vsel %vm837_vm7, %v838_v60, %v836_v45 }
 0x15b   : > { %v840_v22 = vmul.f32 3.0, %v839_v51 }
 0x15d   : > { %v841_v56 = vceil.f32 %v840_v22 }
 0x15f   : > { %v917_v2 = vsel %vm2323_vm3, %v841_v56, 0.0 }
 0x160   : > { %1212 = vst [vmem:[%s2156_s29 + $0x50] sm:$0xff] %v917_v2 }
 0x161   : > { %1518 = shalt.err (!%p1515_p0)
}
 0x162   : > { %s1519_s22 = scalar_lea.hbm %s2338_s17, 1408  ;;  %s1523_s4 = scalar_lea.hbm %s2453_s15, 2816 }
 0x163   : > { %p1520_p3 = scmp.ne.s32.totalorder %s2338_s17, %s1519_s22  ;;  %p1524_p6 = scmp.lt.u32.totalorder %s2338_s17, %s2453_s15 }
 0x164   : > { %p1525_p5 = scmp.lt.u32.totalorder %s1523_s4, %s1519_s22  ;;  %p1527_p4 = scmp.lt.u32.totalorder %s1519_s22, %s2338_s17 }
 0x165   : > { %p1521_p7 = pnand %p1520_p3, %p2454_p11 }
 0x166   : > { %p1526_p1 = por %p1525_p5, %p1524_p6 }
 0x167   : > { %p1522_p2 = pneg %p1521_p7 }
 0x168   : > { %p1528_p9 = por %p1527_p4, %p1526_p1 }
 0x16a   : > { %p1529_p10 = pnand %p1528_p9, %p1522_p2 }
 0x16c   : > { %1532 = shalt.err (!%p1529_p10)
}
 0x16d   : > { %s1604_s25 = smov 128   ;;  %s1605_s2 = smov 256  }
 0x16e   : > { %s1606_s8 = smov 8  }
 0x16f   : > { %1242 = dma.vmem_to_hbm [thread:$0]  (%p2454_p11), %s2340_s14, 1408, %s2338_s17, %s943_s10, %s1604_s25, %s1605_s2, %s1606_s8  }
 0x170 PF: > { %s2455_s27 = sld [smem:[#allocation24_spill]]  ;;  %s2456_s9 = sld [smem:[#allocation29_spill]] }
 0x171   : > { %s2457_s29 = sld [smem:[#allocation26_spill]] }
 0x176   : > { %s970_s0 = sand.u32 1, %s2455_s27   ;;  %p2458_p13 = scmp.ne.s32.totalorder %s2456_s9, 0 }
 0x177   : > { %p2459_p8 = scmp.ge.s32.totalorder %s2457_s29, 2  ;;  %s971_s23 = scalar_lea.sflag [#allocation4], %s970_s0 }
 0x179   : > { %p1268_p12 = pnand %p2459_p8, %p2458_p13 }
 0x17b   : > { %1574 = dma.done.wait (!%p1268_p12), %s971_s23, 1408  }
 0x17c   : > { %1576 = vsyncadd (!%p1268_p12), %s971_s23, 4294965888  ;;  %s2460_s30 = sld [smem:[#allocation27_spill]]  ;;  %s2461_s19 = sld [smem:[#allocation25_spill]] }
 0x17d   : > { %s2462_s29 = sld [smem:[#allocation28_spill]]  ;;  %s2463_s27 = smov %s1583_s28 }
 0x182   : > { %p30_p0 = scmp.ge.s32.totalorder %s2460_s30, 4   ;;  %s2464_s28 = smov %s2461_s19 }
 0x184   :  { %32 = sbr.rel (!%p30_p0) target bundleno = 17 (0x11), region = 179 }
 0x18b   :  { %976 = vsyncpa [#allocation3], 1 }
 0x18c   :  { %978 = vsyncpa [#allocation3 + $0x1], 1 }
 0x18d   :  { %979 = vsyncpa [#allocation12], 1 }
 0x18e   :  { %981 = vsyncpa [#allocation12 + $0x1], 1 }
 0x18f   :  { %982 = vsyncpa [#allocation15], 1 }
 0x190   :  { %984 = vsyncpa [#allocation15 + $0x1], 1 }
 0x191   :  { %985 = vsyncpa [#allocation4], 1 }
 0x192   :  { %987 = vsyncpa [#allocation4 + $0x1], 1 }
 0x193   :  { %988 = vsyncpa [#allocation5], 1 }
 0x194   :  { %990 = vsyncpa [#allocation5 + $0x1], 1 }
 0x195   :  { %991 = vsyncpa [#allocation8], 1 }
 0x196   :  { %992 = vsyncpa [#allocation6], 1 }
 0x197   :  { %994 = vsyncpa [#allocation6 + $0x1], 1 }

</bundles_post_ra>
